<compile_context>
chip_gen: v6e
topology: v6e:2x2x1
jax: 0.10.0
libtpu: 0.0.40
codegen_flags: <defaults>
</compile_context>

<pallas_src>
import jax
import jax.numpy as jnp
from jax import lax
from jax.experimental import pallas as pl
from jax.experimental.pallas import tpu as pltpu

K = 5  # Conv1d kernel size (both convs)


def forward_pallas(x, p, *, dot_dtype=jnp.bfloat16, eps=1e-5):
    """Pallas forward pass. x: (B, T, Cin) float32. Returns (B, num_classes) f32."""
    f32 = jnp.float32
    B, T, Cin = x.shape
    assert T % 4 == 0, "kernel assumes input_length divisible by 4"
    T2, T4 = T // 2, T // 4
    C1 = p['conv1_w'].shape[0]          # 32
    C2 = p['conv2_w'].shape[0]          # 64
    H = p['fc1_w'].shape[0]             # 64
    nc = p['fc2_w'].shape[0]

    # ---- fold eval-mode BatchNorm into conv weights (scale) + per-channel bias ----
    s1 = p['bn1_gamma'] / jnp.sqrt(p['bn1_var'] + eps)
    b1 = p['bn1_beta'] + s1 * (p['conv1_b'] - p['bn1_mean'])                            # (C1,)
    w1 = jnp.transpose(p['conv1_w'] * s1[:, None, None], (2, 1, 0)).astype(dot_dtype)   # (K, Cin, C1)
    s2 = p['bn2_gamma'] / jnp.sqrt(p['bn2_var'] + eps)
    b2 = p['bn2_beta'] + s2 * (p['conv2_b'] - p['bn2_mean'])                             # (C2,)
    w2 = jnp.transpose(p['conv2_w'] * s2[:, None, None], (2, 1, 0)).astype(dot_dtype)   # (K, C1, C2)

    # ---- fc weights: re-laid so the kernel's (t4, c) row order matches PyTorch's
    # channel-major flatten (flat index = c * T4 + t4) ----
    wf1 = jnp.transpose(p['fc1_w'].reshape(H, C2, T4), (2, 1, 0)).astype(dot_dtype)     # (T4, C2, H)
    wf2 = jnp.transpose(p['fc2_w']).astype(dot_dtype)                                    # (H, nc)

    # ---- pack the four tiny bias rows into one (4, BW) f32 tile ----
    BW = max(C1, C2, H, nc)
    bias = jnp.zeros((4, BW), f32)
    bias = bias.at[0, :C1].set(b1.astype(f32))
    bias = bias.at[1, :C2].set(b2.astype(f32))
    bias = bias.at[2, :H].set(p['fc1_b'].astype(f32))
    bias = bias.at[3, :nc].set(p['fc2_b'].astype(f32))

    def kernel(x_ref, w1_ref, w2_ref, wf1_ref, wf2_ref, bias_ref, out_ref,
               xpad_ref, h1_ref, p1pad_ref, h2_ref):
        bb1 = bias_ref[0:1, 0:C1]
        bb2 = bias_ref[1:2, 0:C2]
        bf1 = bias_ref[2:3, 0:H]
        bf2 = bias_ref[3:4, 0:nc]

        # conv1 (+ folded BN1) + ReLU: tap accumulation over K shifted reads of a
        # zero-padded VMEM scratch (im2col built in VMEM; no lane concat, no x_col).
        xpad_ref[...] = jnp.zeros_like(xpad_ref)
        xpad_ref[pl.ds(2, T), :] = x_ref[...].astype(dot_dtype)
        acc1 = jnp.zeros((T, C1), f32)
        for k in range(K):
            acc1 = acc1 + jnp.dot(xpad_ref[pl.ds(k, T), :], w1_ref[k],
                                  preferred_element_type=f32)
        h1_ref[pl.ds(0, T), :] = jnp.maximum(acc1 + bb1, 0.0)

        # pool1: strided sublane reads + VPU max, written into the zero-padded
        # conv2 input scratch (the MXU does no pooling work).
        p1pad_ref[...] = jnp.zeros_like(p1pad_ref)
        pooled1 = jnp.maximum(h1_ref[pl.ds(0, T2, stride=2), :],
                              h1_ref[pl.ds(1, T2, stride=2), :])          # (T2, C1)
        p1pad_ref[pl.ds(2, T2), :] = pooled1.astype(dot_dtype)

        # conv2 (+ folded BN2) + ReLU: tap accumulation, contraction C1 per tap.
        acc2 = jnp.zeros((T2, C2), f32)
        for k in range(K):
            acc2 = acc2 + jnp.dot(p1pad_ref[pl.ds(k, T2), :], w2_ref[k],
                                  preferred_element_type=f32)
        h2_ref[pl.ds(0, T2), :] = jnp.maximum(acc2 + bb2, 0.0)

        # pool2: strided reads + VPU max.
        pooled2 = jnp.maximum(h2_ref[pl.ds(0, T4, stride=2), :],
                              h2_ref[pl.ds(1, T4, stride=2), :]).astype(dot_dtype)  # (T4, C2)

        # fc1 + ReLU: accumulate over the T4 pooled rows (no T4-wide lane concat);
        # PyTorch's flatten order is absorbed into the wf1 re-layout.
        z = jnp.zeros((1, H), f32)
        for t in range(T4):
            z = z + jnp.dot(pooled2[t:t + 1, :], wf1_ref[t],
                            preferred_element_type=f32)
        z = jnp.maximum(z + bf1, 0.0).astype(dot_dtype)

        # fc2.
        out = jnp.dot(z, wf2_ref[...], preferred_element_type=f32) + bf2
        out_ref[...] = out.astype(out_ref.dtype)

    dsize = jnp.dtype(dot_dtype).itemsize
    flops = 2 * B * (T * K * Cin * C1 + T2 * K * C1 * C2 + T4 * C2 * H + H * nc)
    bytes_accessed = (B * T * Cin * 4 + B * nc * 4 + 4 * BW * 4
                      + (K * Cin * C1 + K * C1 * C2 + T4 * C2 * H + H * nc) * dsize)

    out = pl.pallas_call(
        kernel,
        out_shape=jax.ShapeDtypeStruct((B, 1, nc), f32),
        grid=(B,),
        in_specs=[
            pl.BlockSpec((None, T, Cin), lambda b: (b, 0, 0)),   # x: one batch element / step
            pl.BlockSpec((K, Cin, C1), lambda b: (0, 0, 0)),     # conv1 weights (resident)
            pl.BlockSpec((K, C1, C2), lambda b: (0, 0, 0)),      # conv2 weights
            pl.BlockSpec((T4, C2, H), lambda b: (0, 0, 0)),      # fc1 weights
            pl.BlockSpec((H, nc), lambda b: (0, 0)),             # fc2 weights
            pl.BlockSpec((4, BW), lambda b: (0, 0)),             # packed biases
        ],
        out_specs=pl.BlockSpec((None, 1, nc), lambda b: (b, 0, 0)),
        scratch_shapes=[
            pltpu.VMEM((T + 4, Cin), dot_dtype),   # zero-padded conv1 input
            pltpu.VMEM((T + 2, C1), f32),          # conv1 activation (pool1 source)
            pltpu.VMEM((T2 + 4, C1), dot_dtype),   # zero-padded conv2 input
            pltpu.VMEM((T2 + 2, C2), f32),         # conv2 activation (pool2 source)
        ],
        compiler_params=pltpu.CompilerParams(dimension_semantics=("parallel",)),
        cost_estimate=pl.CostEstimate(flops=flops, transcendentals=0,
                                      bytes_accessed=bytes_accessed),
    )(x.astype(f32), w1, w2, wf1, wf2, bias)
    return out.reshape(B, nc)


def forward_reference(x, p, eps=1e-5):
    """Pure-JAX reference matching the PyTorch forward (BN in eval mode)."""
    h = jnp.transpose(x, (0, 2, 1))                                   # (B, Cin, T)

    def block(h, w, b, gamma, beta, mean, var):
        y = lax.conv_general_dilated(h, w, window_strides=(1,),
                                     padding=[(2, 2)],
                                     dimension_numbers=('NCH', 'OIH', 'NCH'))
        y = y + b[None, :, None]
        y = ((y - mean[None, :, None]) / jnp.sqrt(var[None, :, None] + eps)
             * gamma[None, :, None] + beta[None, :, None])
        y = jnp.maximum(y, 0.0)
        Bx, Cx, Tx = y.shape
        return jnp.max(y.reshape(Bx, Cx, Tx // 2, 2), axis=-1)

    h = block(h, p['conv1_w'], p['conv1_b'], p['bn1_gamma'], p['bn1_beta'],
              p['bn1_mean'], p['bn1_var'])
    h = block(h, p['conv2_w'], p['conv2_b'], p['bn2_gamma'], p['bn2_beta'],
              p['bn2_mean'], p['bn2_var'])
    h = h.reshape(h.shape[0], -1)
    h = jnp.maximum(h @ p['fc1_w'].T + p['fc1_b'], 0.0)
    return h @ p['fc2_w'].T + p['fc2_b']


if __name__ == "__main__":
    # Small shapes consistent with the module: input_channels=8,
    # input_length=32 (divisible by 4), num_classes=2, batch=2.
    B, Cin, T, nc, hidden = 2, 8, 32, 2, 64
    T4 = T // 4

    keys = jax.random.split(jax.random.PRNGKey(0), 17)
    p = {
        'conv1_w':  0.10 * jax.random.normal(keys[0], (32, Cin, 5), jnp.float32),
        'conv1_b':  0.10 * jax.random.normal(keys[1], (32,), jnp.float32),
        'bn1_gamma': 1.0 + 0.10 * jax.random.normal(keys[2], (32,), jnp.float32),
        'bn1_beta': 0.10 * jax.random.normal(keys[3], (32,), jnp.float32),
        'bn1_mean': 0.10 * jax.random.normal(keys[4], (32,), jnp.float32),
        'bn1_var':  1.0 + 0.10 * jnp.abs(jax.random.normal(keys[5], (32,), jnp.float32)),
        'conv2_w':  0.10 * jax.random.normal(keys[6], (64, 32, 5), jnp.float32),
        'conv2_b':  0.10 * jax.random.normal(keys[7], (64,), jnp.float32),
        'bn2_gamma': 1.0 + 0.10 * jax.random.normal(keys[8], (64,), jnp.float32),
        'bn2_beta': 0.10 * jax.random.normal(keys[9], (64,), jnp.float32),
        'bn2_mean': 0.10 * jax.random.normal(keys[10], (64,), jnp.float32),
        'bn2_var':  1.0 + 0.10 * jnp.abs(jax.random.normal(keys[11], (64,), jnp.float32)),
        'fc1_w':    0.05 * jax.random.normal(keys[12], (hidden, 64 * T4), jnp.float32),
        'fc1_b':    0.10 * jax.random.normal(keys[13], (hidden,), jnp.float32),
        'fc2_w':    0.10 * jax.random.normal(keys[14], (nc, hidden), jnp.float32),
        'fc2_b':    0.10 * jax.random.normal(keys[15], (nc,), jnp.float32),
    }
    x = jax.random.normal(keys[16], (B, T, Cin), jnp.float32)

    ref = forward_reference(x, p)

    # f32 MXU-operand path: tight numerical check against the reference.
    out_f32 = jax.block_until_ready(forward_pallas(x, p, dot_dtype=jnp.float32))
    assert out_f32.shape == (B, nc)
    assert jnp.allclose(out_f32, ref, atol=1e-3, rtol=1e-3), (out_f32, ref)

    # bf16 MXU-operand path (fast path), f32 accumulation.
    out_bf16 = jax.block_until_ready(forward_pallas(x, p, dot_dtype=jnp.bfloat16))
    assert out_bf16.shape == (B, nc)
    assert jnp.allclose(out_bf16, ref, atol=5e-2, rtol=5e-2), (out_bf16, ref)

    print("KERNEL_OK")
</pallas_src>

<mosaic_0001>
module attributes {stable_mosaic.version = 11 : i64} {
  func.func @kernel(%arg0: i32, %arg1: memref<1x32x8xf32, #tpu.memory_space<vmem>>, %arg2: memref<5x8x32xf32, #tpu.memory_space<vmem>>, %arg3: memref<5x32x64xf32, #tpu.memory_space<vmem>>, %arg4: memref<8x64x64xf32, #tpu.memory_space<vmem>>, %arg5: memref<64x2xf32, #tpu.memory_space<vmem>>, %arg6: memref<4x64xf32, #tpu.memory_space<vmem>>, %arg7: memref<1x1x2xf32, #tpu.memory_space<vmem>>, %arg8: memref<36x8xf32, #tpu.memory_space<vmem>>, %arg9: memref<34x32xf32, #tpu.memory_space<vmem>>, %arg10: memref<20x32xf32, #tpu.memory_space<vmem>>, %arg11: memref<18x64xf32, #tpu.memory_space<vmem>>) attributes {dimension_semantics = [#tpu.dimension_semantics<parallel>], iteration_bounds = array<i64: 2>, scalar_prefetch = 0 : i64, scratch_operands = 4 : i64, tpu.core_type = #tpu.core_type<tc>, window_params = [{transform_indices = @transform_0, window_bounds = array<i64: 1, 32, 8>}, {pipeline_mode = #tpu.pipeline_mode<synchronous>, transform_indices = @transform_1, window_bounds = array<i64: 5, 8, 32>}, {pipeline_mode = #tpu.pipeline_mode<synchronous>, transform_indices = @transform_2, window_bounds = array<i64: 5, 32, 64>}, {pipeline_mode = #tpu.pipeline_mode<synchronous>, transform_indices = @transform_3, window_bounds = array<i64: 8, 64, 64>}, {pipeline_mode = #tpu.pipeline_mode<synchronous>, transform_indices = @transform_4, window_bounds = array<i64: 64, 2>}, {pipeline_mode = #tpu.pipeline_mode<synchronous>, transform_indices = @transform_5, window_bounds = array<i64: 4, 64>}, {transform_indices = @transform_6, window_bounds = array<i64: 1, 1, 2>}]} {
    %c0 = arith.constant 0 : index
    %c0_0 = arith.constant 0 : index
    %0 = vector.load %arg6[%c0, %c0_0] : memref<4x64xf32, #tpu.memory_space<vmem>>, vector<1x32xf32>
    %c1 = arith.constant 1 : index
    %c0_1 = arith.constant 0 : index
    %1 = vector.load %arg6[%c1, %c0_1] : memref<4x64xf32, #tpu.memory_space<vmem>>, vector<1x64xf32>
    %c2 = arith.constant 2 : index
    %c0_2 = arith.constant 0 : index
    %2 = vector.load %arg6[%c2, %c0_2] : memref<4x64xf32, #tpu.memory_space<vmem>>, vector<1x64xf32>
    %c3 = arith.constant 3 : index
    %c0_3 = arith.constant 0 : index
    %3 = vector.load %arg6[%c3, %c0_3] : memref<4x64xf32, #tpu.memory_space<vmem>>, vector<1x2xf32>
    %cst = arith.constant 0.000000e+00 : f32
    %4 = vector.broadcast %cst : f32 to vector<36x8xf32>
    %c0_4 = arith.constant 0 : index
    %c0_5 = arith.constant 0 : index
    %5 = vector.load %arg8[%c0_4, %c0_5] : memref<36x8xf32, #tpu.memory_space<vmem>>, vector<36x8xf32>
    tpu.vector_store %arg8[%c0_4, %c0_5], %4 {strides = array<i32>} : memref<36x8xf32, #tpu.memory_space<vmem>>, vector<36x8xf32>,
    %c0_6 = arith.constant 0 : index
    %c0_7 = arith.constant 0 : index
    %c0_8 = arith.constant 0 : index
    %6 = vector.load %arg1[%c0_6, %c0_7, %c0_8] : memref<1x32x8xf32, #tpu.memory_space<vmem>>, vector<1x32x8xf32>
    %7 = vector.shape_cast %6 : vector<1x32x8xf32> to vector<32x8xf32>
    %c2_9 = arith.constant 2 : index
    %c0_10 = arith.constant 0 : index
    %8 = vector.load %arg8[%c2_9, %c0_10] : memref<36x8xf32, #tpu.memory_space<vmem>>, vector<32x8xf32>
    tpu.vector_store %arg8[%c2_9, %c0_10], %7 {strides = array<i32>} : memref<36x8xf32, #tpu.memory_space<vmem>>, vector<32x8xf32>,
    %cst_11 = arith.constant 0.000000e+00 : f32
    %9 = vector.broadcast %cst_11 : f32 to vector<32x32xf32>
    %c0_12 = arith.constant 0 : index
    %c0_13 = arith.constant 0 : index
    %10 = vector.load %arg8[%c0_12, %c0_13] : memref<36x8xf32, #tpu.memory_space<vmem>>, vector<32x8xf32>
    %c0_14 = arith.constant 0 : index
    %c0_15 = arith.constant 0 : index
    %c0_16 = arith.constant 0 : index
    %11 = vector.load %arg2[%c0_14, %c0_15, %c0_16] : memref<5x8x32xf32, #tpu.memory_space<vmem>>, vector<1x8x32xf32>
    %12 = vector.shape_cast %11 : vector<1x8x32xf32> to vector<8x32xf32>
    %cst_17 = arith.constant dense<0.000000e+00> : vector<32x32xf32>
    %13 = tpu.matmul %10, %12, %cst_17 {dimension_numbers = #tpu.dot_dimension_numbers<[1], [0], [0], [1], [0, 0, 1, 1], [], []>} : vector<32x8xf32>, vector<8x32xf32>, vector<32x32xf32> -> vector<32x32xf32>
    %14 = arith.addf %9, %13 : vector<32x32xf32>
    %c1_18 = arith.constant 1 : index
    %c0_19 = arith.constant 0 : index
    %15 = vector.load %arg8[%c1_18, %c0_19] : memref<36x8xf32, #tpu.memory_space<vmem>>, vector<32x8xf32>
    %c1_20 = arith.constant 1 : index
    %c0_21 = arith.constant 0 : index
    %c0_22 = arith.constant 0 : index
    %16 = vector.load %arg2[%c1_20, %c0_21, %c0_22] : memref<5x8x32xf32, #tpu.memory_space<vmem>>, vector<1x8x32xf32>
    %17 = vector.shape_cast %16 : vector<1x8x32xf32> to vector<8x32xf32>
    %cst_23 = arith.constant dense<0.000000e+00> : vector<32x32xf32>
    %18 = tpu.matmul %15, %17, %cst_23 {dimension_numbers = #tpu.dot_dimension_numbers<[1], [0], [0], [1], [0, 0, 1, 1], [], []>} : vector<32x8xf32>, vector<8x32xf32>, vector<32x32xf32> -> vector<32x32xf32>
    %19 = arith.addf %14, %18 : vector<32x32xf32>
    %c2_24 = arith.constant 2 : index
    %c0_25 = arith.constant 0 : index
    %20 = vector.load %arg8[%c2_24, %c0_25] : memref<36x8xf32, #tpu.memory_space<vmem>>, vector<32x8xf32>
    %c2_26 = arith.constant 2 : index
    %c0_27 = arith.constant 0 : index
    %c0_28 = arith.constant 0 : index
    %21 = vector.load %arg2[%c2_26, %c0_27, %c0_28] : memref<5x8x32xf32, #tpu.memory_space<vmem>>, vector<1x8x32xf32>
    %22 = vector.shape_cast %21 : vector<1x8x32xf32> to vector<8x32xf32>
    %cst_29 = arith.constant dense<0.000000e+00> : vector<32x32xf32>
    %23 = tpu.matmul %20, %22, %cst_29 {dimension_numbers = #tpu.dot_dimension_numbers<[1], [0], [0], [1], [0, 0, 1, 1], [], []>} : vector<32x8xf32>, vector<8x32xf32>, vector<32x32xf32> -> vector<32x32xf32>
    %24 = arith.addf %19, %23 : vector<32x32xf32>
    %c3_30 = arith.constant 3 : index
    %c0_31 = arith.constant 0 : index
    %25 = vector.load %arg8[%c3_30, %c0_31] : memref<36x8xf32, #tpu.memory_space<vmem>>, vector<32x8xf32>
    %c3_32 = arith.constant 3 : index
    %c0_33 = arith.constant 0 : index
    %c0_34 = arith.constant 0 : index
    %26 = vector.load %arg2[%c3_32, %c0_33, %c0_34] : memref<5x8x32xf32, #tpu.memory_space<vmem>>, vector<1x8x32xf32>
    %27 = vector.shape_cast %26 : vector<1x8x32xf32> to vector<8x32xf32>
    %cst_35 = arith.constant dense<0.000000e+00> : vector<32x32xf32>
    %28 = tpu.matmul %25, %27, %cst_35 {dimension_numbers = #tpu.dot_dimension_numbers<[1], [0], [0], [1], [0, 0, 1, 1], [], []>} : vector<32x8xf32>, vector<8x32xf32>, vector<32x32xf32> -> vector<32x32xf32>
    %29 = arith.addf %24, %28 : vector<32x32xf32>
    %c4 = arith.constant 4 : index
    %c0_36 = arith.constant 0 : index
    %30 = vector.load %arg8[%c4, %c0_36] : memref<36x8xf32, #tpu.memory_space<vmem>>, vector<32x8xf32>
    %c4_37 = arith.constant 4 : index
    %c0_38 = arith.constant 0 : index
    %c0_39 = arith.constant 0 : index
    %31 = vector.load %arg2[%c4_37, %c0_38, %c0_39] : memref<5x8x32xf32, #tpu.memory_space<vmem>>, vector<1x8x32xf32>
    %32 = vector.shape_cast %31 : vector<1x8x32xf32> to vector<8x32xf32>
    %cst_40 = arith.constant dense<0.000000e+00> : vector<32x32xf32>
    %33 = tpu.matmul %30, %32, %cst_40 {dimension_numbers = #tpu.dot_dimension_numbers<[1], [0], [0], [1], [0, 0, 1, 1], [], []>} : vector<32x8xf32>, vector<8x32xf32>, vector<32x32xf32> -> vector<32x32xf32>
    %34 = arith.addf %29, %33 : vector<32x32xf32>
    %35 = vector.broadcast %0 : vector<1x32xf32> to vector<32x32xf32>
    %36 = arith.addf %34, %35 : vector<32x32xf32>
    %cst_41 = arith.constant 0.000000e+00 : f32
    %37 = vector.broadcast %cst_41 : f32 to vector<32x32xf32>
    %38 = arith.maximumf %36, %37 : vector<32x32xf32>
    %c0_42 = arith.constant 0 : index
    %c0_43 = arith.constant 0 : index
    %39 = vector.load %arg9[%c0_42, %c0_43] : memref<34x32xf32, #tpu.memory_space<vmem>>, vector<32x32xf32>
    tpu.vector_store %arg9[%c0_42, %c0_43], %38 {strides = array<i32>} : memref<34x32xf32, #tpu.memory_space<vmem>>, vector<32x32xf32>,
    %cst_44 = arith.constant 0.000000e+00 : f32
    %40 = vector.broadcast %cst_44 : f32 to vector<20x32xf32>
    %c0_45 = arith.constant 0 : index
    %c0_46 = arith.constant 0 : index
    %41 = vector.load %arg10[%c0_45, %c0_46] : memref<20x32xf32, #tpu.memory_space<vmem>>, vector<20x32xf32>
    tpu.vector_store %arg10[%c0_45, %c0_46], %40 {strides = array<i32>} : memref<20x32xf32, #tpu.memory_space<vmem>>, vector<20x32xf32>,
    %c0_47 = arith.constant 0 : index
    %c0_48 = arith.constant 0 : index
    %42 = tpu.strided_load %arg9[%c0_47, %c0_48] {strides = array<i32: 2, 1>} : memref<34x32xf32, #tpu.memory_space<vmem>>, vector<16x32xf32>
    %c1_49 = arith.constant 1 : index
    %c0_50 = arith.constant 0 : index
    %43 = tpu.strided_load %arg9[%c1_49, %c0_50] {strides = array<i32: 2, 1>} : memref<34x32xf32, #tpu.memory_space<vmem>>, vector<16x32xf32>
    %44 = arith.maximumf %42, %43 : vector<16x32xf32>
    %c2_51 = arith.constant 2 : index
    %c0_52 = arith.constant 0 : index
    %45 = vector.load %arg10[%c2_51, %c0_52] : memref<20x32xf32, #tpu.memory_space<vmem>>, vector<16x32xf32>
    tpu.vector_store %arg10[%c2_51, %c0_52], %44 {strides = array<i32>} : memref<20x32xf32, #tpu.memory_space<vmem>>, vector<16x32xf32>,
    %cst_53 = arith.constant 0.000000e+00 : f32
    %46 = vector.broadcast %cst_53 : f32 to vector<16x64xf32>
    %c0_54 = arith.constant 0 : index
    %c0_55 = arith.constant 0 : index
    %47 = vector.load %arg10[%c0_54, %c0_55] : memref<20x32xf32, #tpu.memory_space<vmem>>, vector<16x32xf32>
    %c0_56 = arith.constant 0 : index
    %c0_57 = arith.constant 0 : index
    %c0_58 = arith.constant 0 : index
    %48 = vector.load %arg3[%c0_56, %c0_57, %c0_58] : memref<5x32x64xf32, #tpu.memory_space<vmem>>, vector<1x32x64xf32>
    %49 = vector.shape_cast %48 : vector<1x32x64xf32> to vector<32x64xf32>
    %cst_59 = arith.constant dense<0.000000e+00> : vector<16x64xf32>
    %50 = tpu.matmul %47, %49, %cst_59 {dimension_numbers = #tpu.dot_dimension_numbers<[1], [0], [0], [1], [0, 0, 1, 1], [], []>} : vector<16x32xf32>, vector<32x64xf32>, vector<16x64xf32> -> vector<16x64xf32>
    %51 = arith.addf %46, %50 : vector<16x64xf32>
    %c1_60 = arith.constant 1 : index
    %c0_61 = arith.constant 0 : index
    %52 = vector.load %arg10[%c1_60, %c0_61] : memref<20x32xf32, #tpu.memory_space<vmem>>, vector<16x32xf32>
    %c1_62 = arith.constant 1 : index
    %c0_63 = arith.constant 0 : index
    %c0_64 = arith.constant 0 : index
    %53 = vector.load %arg3[%c1_62, %c0_63, %c0_64] : memref<5x32x64xf32, #tpu.memory_space<vmem>>, vector<1x32x64xf32>
    %54 = vector.shape_cast %53 : vector<1x32x64xf32> to vector<32x64xf32>
    %cst_65 = arith.constant dense<0.000000e+00> : vector<16x64xf32>
    %55 = tpu.matmul %52, %54, %cst_65 {dimension_numbers = #tpu.dot_dimension_numbers<[1], [0], [0], [1], [0, 0, 1, 1], [], []>} : vector<16x32xf32>, vector<32x64xf32>, vector<16x64xf32> -> vector<16x64xf32>
    %56 = arith.addf %51, %55 : vector<16x64xf32>
    %c2_66 = arith.constant 2 : index
    %c0_67 = arith.constant 0 : index
    %57 = vector.load %arg10[%c2_66, %c0_67] : memref<20x32xf32, #tpu.memory_space<vmem>>, vector<16x32xf32>
    %c2_68 = arith.constant 2 : index
    %c0_69 = arith.constant 0 : index
    %c0_70 = arith.constant 0 : index
    %58 = vector.load %arg3[%c2_68, %c0_69, %c0_70] : memref<5x32x64xf32, #tpu.memory_space<vmem>>, vector<1x32x64xf32>
    %59 = vector.shape_cast %58 : vector<1x32x64xf32> to vector<32x64xf32>
    %cst_71 = arith.constant dense<0.000000e+00> : vector<16x64xf32>
    %60 = tpu.matmul %57, %59, %cst_71 {dimension_numbers = #tpu.dot_dimension_numbers<[1], [0], [0], [1], [0, 0, 1, 1], [], []>} : vector<16x32xf32>, vector<32x64xf32>, vector<16x64xf32> -> vector<16x64xf32>
    %61 = arith.addf %56, %60 : vector<16x64xf32>
    %c3_72 = arith.constant 3 : index
    %c0_73 = arith.constant 0 : index
    %62 = vector.load %arg10[%c3_72, %c0_73] : memref<20x32xf32, #tpu.memory_space<vmem>>, vector<16x32xf32>
    %c3_74 = arith.constant 3 : index
    %c0_75 = arith.constant 0 : index
    %c0_76 = arith.constant 0 : index
    %63 = vector.load %arg3[%c3_74, %c0_75, %c0_76] : memref<5x32x64xf32, #tpu.memory_space<vmem>>, vector<1x32x64xf32>
    %64 = vector.shape_cast %63 : vector<1x32x64xf32> to vector<32x64xf32>
    %cst_77 = arith.constant dense<0.000000e+00> : vector<16x64xf32>
    %65 = tpu.matmul %62, %64, %cst_77 {dimension_numbers = #tpu.dot_dimension_numbers<[1], [0], [0], [1], [0, 0, 1, 1], [], []>} : vector<16x32xf32>, vector<32x64xf32>, vector<16x64xf32> -> vector<16x64xf32>
    %66 = arith.addf %61, %65 : vector<16x64xf32>
    %c4_78 = arith.constant 4 : index
    %c0_79 = arith.constant 0 : index
    %67 = vector.load %arg10[%c4_78, %c0_79] : memref<20x32xf32, #tpu.memory_space<vmem>>, vector<16x32xf32>
    %c4_80 = arith.constant 4 : index
    %c0_81 = arith.constant 0 : index
    %c0_82 = arith.constant 0 : index
    %68 = vector.load %arg3[%c4_80, %c0_81, %c0_82] : memref<5x32x64xf32, #tpu.memory_space<vmem>>, vector<1x32x64xf32>
    %69 = vector.shape_cast %68 : vector<1x32x64xf32> to vector<32x64xf32>
    %cst_83 = arith.constant dense<0.000000e+00> : vector<16x64xf32>
    %70 = tpu.matmul %67, %69, %cst_83 {dimension_numbers = #tpu.dot_dimension_numbers<[1], [0], [0], [1], [0, 0, 1, 1], [], []>} : vector<16x32xf32>, vector<32x64xf32>, vector<16x64xf32> -> vector<16x64xf32>
    %71 = arith.addf %66, %70 : vector<16x64xf32>
    %72 = vector.broadcast %1 : vector<1x64xf32> to vector<16x64xf32>
    %73 = arith.addf %71, %72 : vector<16x64xf32>
    %cst_84 = arith.constant 0.000000e+00 : f32
    %74 = vector.broadcast %cst_84 : f32 to vector<16x64xf32>
    %75 = arith.maximumf %73, %74 : vector<16x64xf32>
    %c0_85 = arith.constant 0 : index
    %c0_86 = arith.constant 0 : index
    %76 = vector.load %arg11[%c0_85, %c0_86] : memref<18x64xf32, #tpu.memory_space<vmem>>, vector<16x64xf32>
    tpu.vector_store %arg11[%c0_85, %c0_86], %75 {strides = array<i32>} : memref<18x64xf32, #tpu.memory_space<vmem>>, vector<16x64xf32>,
    %c0_87 = arith.constant 0 : index
    %c0_88 = arith.constant 0 : index
    %77 = tpu.strided_load %arg11[%c0_87, %c0_88] {strides = array<i32: 2, 1>} : memref<18x64xf32, #tpu.memory_space<vmem>>, vector<8x64xf32>
    %c1_89 = arith.constant 1 : index
    %c0_90 = arith.constant 0 : index
    %78 = tpu.strided_load %arg11[%c1_89, %c0_90] {strides = array<i32: 2, 1>} : memref<18x64xf32, #tpu.memory_space<vmem>>, vector<8x64xf32>
    %79 = arith.maximumf %77, %78 : vector<8x64xf32>
    %cst_91 = arith.constant 0.000000e+00 : f32
    %80 = vector.broadcast %cst_91 : f32 to vector<1x64xf32>
    %81 = vector.extract_strided_slice %79 {offsets = [0, 0], sizes = [1, 64], strides = [1, 1]} : vector<8x64xf32> to vector<1x64xf32>
    %c0_92 = arith.constant 0 : index
    %c0_93 = arith.constant 0 : index
    %c0_94 = arith.constant 0 : index
    %82 = vector.load %arg4[%c0_92, %c0_93, %c0_94] : memref<8x64x64xf32, #tpu.memory_space<vmem>>, vector<1x64x64xf32>
    %83 = vector.shape_cast %82 : vector<1x64x64xf32> to vector<64x64xf32>
    %cst_95 = arith.constant dense<0.000000e+00> : vector<1x64xf32>
    %84 = tpu.matmul %81, %83, %cst_95 {dimension_numbers = #tpu.dot_dimension_numbers<[1], [0], [0], [1], [0, 0, 1, 1], [], []>} : vector<1x64xf32>, vector<64x64xf32>, vector<1x64xf32> -> vector<1x64xf32>
    %85 = arith.addf %80, %84 : vector<1x64xf32>
    %86 = vector.extract_strided_slice %79 {offsets = [1, 0], sizes = [1, 64], strides = [1, 1]} : vector<8x64xf32> to vector<1x64xf32>
    %c1_96 = arith.constant 1 : index
    %c0_97 = arith.constant 0 : index
    %c0_98 = arith.constant 0 : index
    %87 = vector.load %arg4[%c1_96, %c0_97, %c0_98] : memref<8x64x64xf32, #tpu.memory_space<vmem>>, vector<1x64x64xf32>
    %88 = vector.shape_cast %87 : vector<1x64x64xf32> to vector<64x64xf32>
    %cst_99 = arith.constant dense<0.000000e+00> : vector<1x64xf32>
    %89 = tpu.matmul %86, %88, %cst_99 {dimension_numbers = #tpu.dot_dimension_numbers<[1], [0], [0], [1], [0, 0, 1, 1], [], []>} : vector<1x64xf32>, vector<64x64xf32>, vector<1x64xf32> -> vector<1x64xf32>
    %90 = arith.addf %85, %89 : vector<1x64xf32>
    %91 = vector.extract_strided_slice %79 {offsets = [2, 0], sizes = [1, 64], strides = [1, 1]} : vector<8x64xf32> to vector<1x64xf32>
    %c2_100 = arith.constant 2 : index
    %c0_101 = arith.constant 0 : index
    %c0_102 = arith.constant 0 : index
    %92 = vector.load %arg4[%c2_100, %c0_101, %c0_102] : memref<8x64x64xf32, #tpu.memory_space<vmem>>, vector<1x64x64xf32>
    %93 = vector.shape_cast %92 : vector<1x64x64xf32> to vector<64x64xf32>
    %cst_103 = arith.constant dense<0.000000e+00> : vector<1x64xf32>
    %94 = tpu.matmul %91, %93, %cst_103 {dimension_numbers = #tpu.dot_dimension_numbers<[1], [0], [0], [1], [0, 0, 1, 1], [], []>} : vector<1x64xf32>, vector<64x64xf32>, vector<1x64xf32> -> vector<1x64xf32>
    %95 = arith.addf %90, %94 : vector<1x64xf32>
    %96 = vector.extract_strided_slice %79 {offsets = [3, 0], sizes = [1, 64], strides = [1, 1]} : vector<8x64xf32> to vector<1x64xf32>
    %c3_104 = arith.constant 3 : index
    %c0_105 = arith.constant 0 : index
    %c0_106 = arith.constant 0 : index
    %97 = vector.load %arg4[%c3_104, %c0_105, %c0_106] : memref<8x64x64xf32, #tpu.memory_space<vmem>>, vector<1x64x64xf32>
    %98 = vector.shape_cast %97 : vector<1x64x64xf32> to vector<64x64xf32>
    %cst_107 = arith.constant dense<0.000000e+00> : vector<1x64xf32>
    %99 = tpu.matmul %96, %98, %cst_107 {dimension_numbers = #tpu.dot_dimension_numbers<[1], [0], [0], [1], [0, 0, 1, 1], [], []>} : vector<1x64xf32>, vector<64x64xf32>, vector<1x64xf32> -> vector<1x64xf32>
    %100 = arith.addf %95, %99 : vector<1x64xf32>
    %101 = vector.extract_strided_slice %79 {offsets = [4, 0], sizes = [1, 64], strides = [1, 1]} : vector<8x64xf32> to vector<1x64xf32>
    %c4_108 = arith.constant 4 : index
    %c0_109 = arith.constant 0 : index
    %c0_110 = arith.constant 0 : index
    %102 = vector.load %arg4[%c4_108, %c0_109, %c0_110] : memref<8x64x64xf32, #tpu.memory_space<vmem>>, vector<1x64x64xf32>
    %103 = vector.shape_cast %102 : vector<1x64x64xf32> to vector<64x64xf32>
    %cst_111 = arith.constant dense<0.000000e+00> : vector<1x64xf32>
    %104 = tpu.matmul %101, %103, %cst_111 {dimension_numbers = #tpu.dot_dimension_numbers<[1], [0], [0], [1], [0, 0, 1, 1], [], []>} : vector<1x64xf32>, vector<64x64xf32>, vector<1x64xf32> -> vector<1x64xf32>
    %105 = arith.addf %100, %104 : vector<1x64xf32>
    %106 = vector.extract_strided_slice %79 {offsets = [5, 0], sizes = [1, 64], strides = [1, 1]} : vector<8x64xf32> to vector<1x64xf32>
    %c5 = arith.constant 5 : index
    %c0_112 = arith.constant 0 : index
    %c0_113 = arith.constant 0 : index
    %107 = vector.load %arg4[%c5, %c0_112, %c0_113] : memref<8x64x64xf32, #tpu.memory_space<vmem>>, vector<1x64x64xf32>
    %108 = vector.shape_cast %107 : vector<1x64x64xf32> to vector<64x64xf32>
    %cst_114 = arith.constant dense<0.000000e+00> : vector<1x64xf32>
    %109 = tpu.matmul %106, %108, %cst_114 {dimension_numbers = #tpu.dot_dimension_numbers<[1], [0], [0], [1], [0, 0, 1, 1], [], []>} : vector<1x64xf32>, vector<64x64xf32>, vector<1x64xf32> -> vector<1x64xf32>
    %110 = arith.addf %105, %109 : vector<1x64xf32>
    %111 = vector.extract_strided_slice %79 {offsets = [6, 0], sizes = [1, 64], strides = [1, 1]} : vector<8x64xf32> to vector<1x64xf32>
    %c6 = arith.constant 6 : index
    %c0_115 = arith.constant 0 : index
    %c0_116 = arith.constant 0 : index
    %112 = vector.load %arg4[%c6, %c0_115, %c0_116] : memref<8x64x64xf32, #tpu.memory_space<vmem>>, vector<1x64x64xf32>
    %113 = vector.shape_cast %112 : vector<1x64x64xf32> to vector<64x64xf32>
    %cst_117 = arith.constant dense<0.000000e+00> : vector<1x64xf32>
    %114 = tpu.matmul %111, %113, %cst_117 {dimension_numbers = #tpu.dot_dimension_numbers<[1], [0], [0], [1], [0, 0, 1, 1], [], []>} : vector<1x64xf32>, vector<64x64xf32>, vector<1x64xf32> -> vector<1x64xf32>
    %115 = arith.addf %110, %114 : vector<1x64xf32>
    %116 = vector.extract_strided_slice %79 {offsets = [7, 0], sizes = [1, 64], strides = [1, 1]} : vector<8x64xf32> to vector<1x64xf32>
    %c7 = arith.constant 7 : index
    %c0_118 = arith.constant 0 : index
    %c0_119 = arith.constant 0 : index
    %117 = vector.load %arg4[%c7, %c0_118, %c0_119] : memref<8x64x64xf32, #tpu.memory_space<vmem>>, vector<1x64x64xf32>
    %118 = vector.shape_cast %117 : vector<1x64x64xf32> to vector<64x64xf32>
    %cst_120 = arith.constant dense<0.000000e+00> : vector<1x64xf32>
    %119 = tpu.matmul %116, %118, %cst_120 {dimension_numbers = #tpu.dot_dimension_numbers<[1], [0], [0], [1], [0, 0, 1, 1], [], []>} : vector<1x64xf32>, vector<64x64xf32>, vector<1x64xf32> -> vector<1x64xf32>
    %120 = arith.addf %115, %119 : vector<1x64xf32>
    %121 = arith.addf %120, %2 : vector<1x64xf32>
    %cst_121 = arith.constant 0.000000e+00 : f32
    %122 = vector.broadcast %cst_121 : f32 to vector<1x64xf32>
    %123 = arith.maximumf %121, %122 : vector<1x64xf32>
    %c0_122 = arith.constant 0 : index
    %c0_123 = arith.constant 0 : index
    %124 = vector.load %arg5[%c0_122, %c0_123] : memref<64x2xf32, #tpu.memory_space<vmem>>, vector<64x2xf32>
    %cst_124 = arith.constant dense<0.000000e+00> : vector<1x2xf32>
    %125 = tpu.matmul %123, %124, %cst_124 {dimension_numbers = #tpu.dot_dimension_numbers<[1], [0], [0], [1], [0, 0, 1, 1], [], []>} : vector<1x64xf32>, vector<64x2xf32>, vector<1x2xf32> -> vector<1x2xf32>
    %126 = arith.addf %125, %3 : vector<1x2xf32>
    %c0_125 = arith.constant 0 : index
    %c0_126 = arith.constant 0 : index
    %c0_127 = arith.constant 0 : index
    %127 = vector.load %arg7[%c0_125, %c0_126, %c0_127] : memref<1x1x2xf32, #tpu.memory_space<vmem>>, vector<1x1x2xf32>
    %128 = vector.shape_cast %127 : vector<1x1x2xf32> to vector<1x2xf32>
    %129 = vector.shape_cast %126 : vector<1x2xf32> to vector<1x1x2xf32>
    tpu.vector_store %arg7[%c0_125, %c0_126, %c0_127], %129 {strides = array<i32>} : memref<1x1x2xf32, #tpu.memory_space<vmem>>, vector<1x1x2xf32>,
    return
  }
  func.func @transform_0(%arg0: i32) -> (i32, i32, i32) {
    %c0_i32 = arith.constant 0 : i32
    %c0_i32_0 = arith.constant 0 : i32
    %c0_i32_1 = arith.constant 0 : i32
    return %arg0, %c0_i32, %c0_i32_0 : i32, i32, i32
  }
  func.func @transform_1(%arg0: i32) -> (i32, i32, i32) {
    %c0_i32 = arith.constant 0 : i32
    %c0_i32_0 = arith.constant 0 : i32
    %c0_i32_1 = arith.constant 0 : i32
    %c0_i32_2 = arith.constant 0 : i32
    return %c0_i32, %c0_i32_0, %c0_i32_1 : i32, i32, i32
  }
  func.func @transform_2(%arg0: i32) -> (i32, i32, i32) {
    %c0_i32 = arith.constant 0 : i32
    %c0_i32_0 = arith.constant 0 : i32
    %c0_i32_1 = arith.constant 0 : i32
    %c0_i32_2 = arith.constant 0 : i32
    return %c0_i32, %c0_i32_0, %c0_i32_1 : i32, i32, i32
  }
  func.func @transform_3(%arg0: i32) -> (i32, i32, i32) {
    %c0_i32 = arith.constant 0 : i32
    %c0_i32_0 = arith.constant 0 : i32
    %c0_i32_1 = arith.constant 0 : i32
    %c0_i32_2 = arith.constant 0 : i32
    return %c0_i32, %c0_i32_0, %c0_i32_1 : i32, i32, i32
  }
  func.func @transform_4(%arg0: i32) -> (i32, i32) {
    %c0_i32 = arith.constant 0 : i32
    %c0_i32_0 = arith.constant 0 : i32
    %c0_i32_1 = arith.constant 0 : i32
    return %c0_i32, %c0_i32_0 : i32, i32
  }
  func.func @transform_5(%arg0: i32) -> (i32, i32) {
    %c0_i32 = arith.constant 0 : i32
    %c0_i32_0 = arith.constant 0 : i32
    %c0_i32_1 = arith.constant 0 : i32
    return %c0_i32, %c0_i32_0 : i32, i32
  }
  func.func @transform_6(%arg0: i32) -> (i32, i32, i32) {
    %c0_i32 = arith.constant 0 : i32
    %c0_i32_0 = arith.constant 0 : i32
    %c0_i32_1 = arith.constant 0 : i32
    return %arg0, %c0_i32, %c0_i32_0 : i32, i32, i32
  }
}

</mosaic_0001>

<bundles_post_ra>
// kernel: tpu_custom_call.1
= control target key start
LH: loop header
LB: loop body
LE: loop exit
PB: predicated region body
PF: predicated region fallthrough
CT: control target
= control target key end

     0   :  { %11 = vsyncpa [#allocation7], 0  ;;  %s3199_s0 = inlined_call_operand.vmem [shape: f32[2,32,8], index: 0, kind: input, shape index: {}]   ;;  %s3200_s1 = inlined_call_operand.vmem [shape: f32[5,8,32], index: 1, kind: input, shape index: {}]   ;;  %s3201_s2 = inlined_call_operand.hbm [shape: f32[5,32,64], index: 2, kind: input, shape index: {}]   ;;  %s3202_s3 = inlined_call_operand.hbm [shape: f32[8,64,64], index: 3, kind: input, shape index: {}]   ;;  %s3203_s4 = inlined_call_operand.vmem [shape: f32[64,2], index: 4, kind: input, shape index: {}]   ;;  %s3204_s5 = inlined_call_operand.vmem [shape: f32[4,64], index: 5, kind: input, shape index: {}]   ;;  %s3205_s6 = inlined_call_operand.hbm [shape: f32[2,1,2], index: 6, kind: output, shape index: {}]  }
   0x1   :  { %12 = vsyncpa [#allocation10], 0 }
   0x2   :  { %13 = vsyncpa [#allocation8], 0 }
   0x3   :  { %15 = vsyncpa [#allocation8 + $0x1], 0  ;;  %s2841_s21 = smov 0   ;;  %s2843_s22 = smov 0  }
   0x4   :  { %s2845_s23 = smov 0   ;;  %s2847_s24 = smov 0  }
   0x5 LB: > { %s2862_s25 = sadd.s32 4294967295, %s2797_s24   ;;  %s2152_s26 = sadd.s32 4294967294, %s2797_s24   ;;  %s2797_s24 = sphi %s2847_s24, %s3219_s24   ;;  %s2793_s23 = sphi %s2845_s23, %s3218_s23   ;;  %s2789_s22 = sphi %s2843_s22, %s3217_s22   ;;  %s2785_s21 = sphi %s2841_s21, %s3216_s21  }
   0x6   : > { %s2866_s27 = sadd.s32 1, %s2797_s24   ;;  %s159_s28 = sadd.s32 1, %s2793_s23 }
   0x7   : > { %s156_s29 = ssub.s32 %s2797_s24, %s2866_s27  ;;  %p169_p0 = scmp.ne.s32.totalorder %s2793_s23, %s2789_s22 }
   0x8   : > { %p157_p1 = scmp.eq.s32.totalorder %s156_s29, 0  ;;  %p170_p2 = scmp.eq.s32.totalorder %s2862_s25, 1 }
   0x9   : > { %p175_p3 = scmp.ne.s32.totalorder %s2789_s22, %s2785_s21  ;;  %p176_p4 = scmp.eq.s32.totalorder %s2152_s26, 1 }
   0xa   : > { %s2877_s30 = scalar_select %p157_p1, %s2793_s23, %s159_s28  }
   0xb   : > { %p2879_p5 = por %p170_p2, %p169_p0  ;;  %p2883_p6 = por %p176_p4, %p175_p3 }
   0xc   : > { %p2153_p7 = scmp.ge.s32.totalorder %s2797_s24, 1  ;;  %p183_p8 = scmp.lt.s32.totalorder %s2797_s24, 3 }
   0xd   : > { %s3208_s8 = scalar_select %p2883_p6, 1, 0 }
   0xe   : > { %p3206_p9 = scmp.eq.s32.totalorder %s2862_s25, 0  ;;  %p2890_p10 = pnand %p2153_p7, %p183_p8 }
   0xf   : > { %s2799_s10 = smov [#allocation6]   ;;  %s2800_s13 = smov [#allocation9]  }
  0x10   : > { %s198_s11 = sshll.u32 %s2799_s10, 4  ;;  %p2623_p11 = pneg %p2890_p10  ;;  %s199_s11 = int_to_ptr.vmem [resolvable:$true] %s198_s11 }
  0x11   : > { %s211_s14 = sshll.u32 %s2800_s13, 4  ;;  %s2688_s15 = scalar_lea.vmem %s199_s11, 2560  ;;  %s212_s14 = int_to_ptr.vmem [resolvable:$true] %s211_s14 }
  0x12   : > { %p2898_p12 = pnand %p3206_p9, %p2623_p11  ;;  %p2689_p0 = scmp.ne.s32.totalorder %s199_s11, %s2688_s15 }
  0x13   : > { %p2696_p3 = scmp.lt.s32.totalorder %s199_s11, %s199_s11  ;;  %p2697_p4 = scmp.lt.s32.totalorder %s2688_s15, %s2688_s15 }
  0x14   : > { %p2679_p13 = pneg %p2898_p12 }
  0x15   : > { %p2698_p7 = por %p2697_p4, %p2696_p3 }
  0x16   : > { %p2691_p1 = pnand %p2689_p0, %p2679_p13 }
  0x18   : > { %p2692_p2 = pneg %p2691_p1 }
  0x1a   : > { %p2699_p8 = pnand %p2698_p7, %p2692_p2 }
  0x1c   : > { %2702 = shalt.err (!%p2699_p8)
}
  0x1d   : > { %s2801_s16 = smov 128   ;;  %s2802_s17 = smov 8  }
  0x1e   : > { %2626 = dma.hbm_to_vmem [thread:$0]  (!%p2898_p12), %s3201_s2, 2560, %s199_s11, [#allocation7], %s2801_s16, %s2801_s16, %s2802_s17  }
  0x1f   : > { %s2714_s20 = scalar_lea.vmem %s212_s14, 8192  ;;  %p2722_p9 = scmp.lt.s32.totalorder %s212_s14, %s212_s14 }
  0x20   : > { %p2715_p11 = scmp.ne.s32.totalorder %s212_s14, %s2714_s20  ;;  %p2723_p6 = scmp.lt.s32.totalorder %s2714_s20, %s2714_s20 }
  0x22   : > { %p2717_p0 = pnand %p2715_p11, %p2679_p13  ;;  %p2724_p3 = por %p2723_p6, %p2722_p9 }
  0x24   : > { %p2718_p1 = pneg %p2717_p0 }
  0x26   : > { %p2725_p2 = pnand %p2724_p3, %p2718_p1 }
  0x28   : > { %2728 = shalt.err (!%p2725_p2)
}
  0x29   : > { %2629 = dma.hbm_to_vmem [thread:$0]  (!%p2898_p12), %s3202_s3, 8192, %s212_s14, [#allocation10], %s2801_s16, %s2801_s16, %s2802_s17  }
  0x2a   : > { %241 = sbr.rel (%p2890_p10) target bundleno = 1000 (0x3e8), region = 44  ;;  %p3211_p4 = scmp.eq.s32.totalorder (!%p2890_p10), %s2862_s25, 0 }
  0x2f   : > { %2772 = dma.done.wait (%p3211_p4), [#allocation7], 2560   ;;  %p3212_p13 = pmov %p3211_p4 }
  0x30   : > { %p3213_p7 = pmov %p3211_p4 }
  0x31   : > { %2774 = vsyncadd (%p3212_p13), [#allocation7], 4294964736 }
  0x32   : > { %2776 = dma.done.wait (%p3213_p7), [#allocation10], 8192   ;;  %p3214_p6 = pmov %p3211_p4 }
  0x33   : > { %p274_p9 = scmp.lt.s32.totalorder %s2862_s25, 1  ;;  %vm283_vm0 = vcmask 64512   ;;  %vm288_vm1 = vcmask 60416   ;;  %v2803_v0 = vmov 0.0   ;;  %v2162_v1 = vld [vmem:[%s3200_s1 + $0x8] sm:$0xff]  ;;  %v302_v3 = vld [vmem:[%s3200_s1] sm:$0xff] }
  0x34   : > { %2778 = vsyncadd (%p3214_p6), [#allocation10], 4294959104  ;;  %284 = vst.msk [vmem:[#allocation2] sm:$0xff] %vm283_vm0, %v2803_v0  ;;  %2347 = vmatprep.subr.mxu1 %v2162_v1  ;;  %v2171_v7 = vld [vmem:[%s3200_s1 + $0x10] sm:$0xff]  ;;  %v2181_v8 = vld [vmem:[%s3200_s1 + $0x20] sm:$0xff]  ;;  %vm836_vm2 = vcmask 261120  }
  0x35   : > { %285 = vst.msk [vmem:[#allocation2 + $0x8] sm:$0xff] %vm283_vm0, %v2803_v0  ;;  %286 = vst.msk [vmem:[#allocation2 + $0x10] sm:$0xff] %vm283_vm0, %v2803_v0  ;;  %s275_s29 = scalar_select %p274_p9, %s2862_s25, 1  ;;  %2348 = vmatpush3.msra.mxu1 %v2162_v1  ;;  %2363 = vmatprep.subr.mxu0 %v2171_v7  ;;  %v2176_v13 = vld [vmem:[%s3200_s1 + $0x18] sm:$0xff]  ;;  %v867_v32 = vld [vmem:[#allocation6 + $0x30] sm:$0xff]  ;;  %vm843_vm3 = vcmask 257024  }
  0x36   : > { %287 = vst.msk [vmem:[#allocation2 + $0x18] sm:$0xff] %vm283_vm0, %v2803_v0  ;;  %2355 = vmatprep.subr.mxu1 %v302_v3  ;;  %2364 = vmatpush3.msra.mxu0 %v2171_v7  ;;  %v868_v30 = vld [vmem:[#allocation6 + $0x38] sm:$0xff]  ;;  %v860_v33 = vld [vmem:[#allocation6 + $0x10] sm:$0xff]  ;;  %v866_v34 = vld [vmem:[#allocation6 + $0x28] sm:$0xff]  ;;  %vm2804_vm4 = vmmov 0   ;;  %vm1309_vm5 = vcmask 523264  }
  0x37   : > { %289 = vst.msk [vmem:[#allocation2 + $0x20] sm:$0xf] %vm288_vm1, %v2803_v0  ;;  %s2210_s9 = sshll.u32 %s275_s29, 5  ;;  %2379 = vmatprep.subr.mxu0 %v2181_v8  ;;  %v861_v31 = vld [vmem:[#allocation6 + $0x18] sm:$0xff]  ;;  %v859_v35 = vld [vmem:[#allocation6 + $0x8] sm:$0xff]  ;;  %v865_v36 = vld [vmem:[#allocation6 + $0x20] sm:$0xff] }
  0x38   : > { %s278_s12 = scalar_lea.vmem %s3199_s0, %s2210_s9  ;;  %841 = vst.msk [vmem:[#allocation4] sm:$0xff] %vm836_vm2, %v2803_v0  ;;  %842 = vst.msk [vmem:[#allocation4 + $0x8] sm:$0xff] %vm836_vm2, %v2803_v0  ;;  %v858_v37 = vld [vmem:[#allocation6] sm:$0xff]  ;;  %v2988_v38 = vld [vmem:[#allocation6 + $0x58] sm:$0xff]  ;;  %s272_s15 = sand.u32 1, %s2789_s22   ;;  %vm2060_vm6 = vcmask 8192  }
  0x39   : > { %v290_v2 = vld [vmem:[%s278_s12] sm:$0xff]  ;;  %v291_v4 = vld [vmem:[%s278_s12 + $0x8] sm:$0xff]  ;;  %v292_v5 = vld [vmem:[%s278_s12 + $0x10] sm:$0xff]  ;;  %844 = vst.msk [vmem:[#allocation4 + $0x10] sm:$0xf] %vm843_vm3, %v2803_v0  ;;  %s2207_s18 = sshll.u32 %s2862_s25, 4 }
  0x3a   : > { %294 = vst.msk [vmem:[#allocation2 + $0x2] sm:$0xff] %vm283_vm0, %v290_v2  ;;  %v293_v6 = vld [vmem:[%s278_s12 + $0x18] sm:$0xff]  ;;  %295 = vst.msk [vmem:[#allocation2 + $0xa] sm:$0xff] %vm283_vm0, %v291_v4  ;;  %v2186_v62 = vld [vmem:[%s3204_s5] ss:$0 sm:$0xff]  ;;  %s273_s19 = scalar_lea.vmem [#allocation11], %s272_s15  ;;  %s3164_s29 = scalar_lea.hbm %s3205_s6, %s2207_s18 }
  0x3b   : > { %296 = vst.msk [vmem:[#allocation2 + $0x12] sm:$0xff] %vm283_vm0, %v292_v5  ;;  %297 = vst.msk [vmem:[#allocation2 + $0x1a] sm:$0xff] %vm283_vm0, %v293_v6  ;;  %v2990_v39 = vld [vmem:[#allocation6 + $0x78] sm:$0xff]  ;;  %s2075_s20 = sshll.u32 %s273_s19, 4  ;;  %s2063_s9 = scalar_lea.sflag [#allocation8], %s272_s15  ;;  %s2076_s20 = int_to_ptr.vmem [resolvable:$true] %s2075_s20 }
  0x3c   : > { %s2729_s10 = scalar_lea.vmem %s2076_s20, 16  ;;  %s2805_s25 = smov [#allocation11]  }
  0x3d   : > { %p2730_p10 = scmp.ne.s32.totalorder %s2076_s20, %s2729_s10  ;;  %s2733_s11 = sshll.u32 %s2805_s25, 4  ;;  %s2734_s11 = int_to_ptr.vmem [resolvable:$false] %s2733_s11 }
  0x3e   : > { %s2735_s12 = scalar_lea.vmem %s2734_s11, 32  ;;  %p2736_p11 = scmp.lt.s32.totalorder %s2076_s20, %s2734_s11 }
  0x3f   : > { %p2731_p12 = pnand %p2730_p10, %p2879_p5  ;;  %p2737_p0 = scmp.lt.s32.totalorder %s2735_s12, %s2729_s10 }
  0x41   : > { %v303_v9 = vld [vmem:[#allocation2 + $0x1] sm:$0xff]  ;;  %v304_v11 = vld [vmem:[#allocation2 + $0x9] sm:$0xff]  ;;  %p2732_p8 = pneg %p2731_p12  ;;  %p2738_p1 = por %p2737_p0, %p2736_p11 }
  0x42   : > { %v503_v10 = vld [vmem:[#allocation2 + $0x2] sm:$0xff]  ;;  %2349 = vmatprep.mubr.msk.f32.mxu1 %vm283_vm0, %v303_v9  ;;  %v305_v12 = vld [vmem:[#allocation2 + $0x11] sm:$0xff]  ;;  %v306_v15 = vld [vmem:[#allocation2 + $0x19] sm:$0xff] }
  0x43   : > { %2365 = vmatprep.mubr.msk.f32.mxu0 %vm283_vm0, %v503_v10  ;;  %2350 = vmatmul.mubr.msk.f32.vlgmr.msra.gmra.mxu1 %vm283_vm0, %v304_v11  ;;  %v504_v14 = vld [vmem:[#allocation2 + $0xa] sm:$0xff]  ;;  %v505_v16 = vld [vmem:[#allocation2 + $0x12] sm:$0xff]  ;;  %v298_v17 = vld [vmem:[#allocation2] sm:$0xff]  ;;  %p2739_p3 = pnand %p2738_p1, %p2732_p8 }
  0x44   : > { %2356 = vmatpush3.msra.mxu1 %v302_v3  ;;  %2352 = vmatprep.mubr.msk.f32.mxu1 %vm283_vm0, %v305_v12  ;;  %v506_v18 = vld [vmem:[#allocation2 + $0x1a] sm:$0xff]  ;;  %v717_v19 = vld [vmem:[#allocation2 + $0x4] sm:$0xff]  ;;  %v300_v21 = vld [vmem:[#allocation2 + $0x10] sm:$0xff] }
  0x45   : > { %2371 = vmatprep.subr.mxu1 %v2176_v13  ;;  %2366 = vmatmul.mubr.msk.f32.vlgmr.msra.gmra.mxu0 %vm283_vm0, %v504_v14  ;;  %v299_v20 = vld [vmem:[#allocation2 + $0x8] sm:$0xff]  ;;  %v719_v23 = vld [vmem:[#allocation2 + $0x14] sm:$0xff]  ;;  %v720_v26 = vld [vmem:[#allocation2 + $0x1c] sm:$0xff] }
  0x46   : > { %2380 = vmatpush3.msra.mxu0 %v2181_v8  ;;  %2368 = vmatprep.mubr.msk.f32.mxu0 %vm283_vm0, %v505_v16  ;;  %v718_v22 = vld [vmem:[#allocation2 + $0xc] sm:$0xff]  ;;  %v301_v24 = vld [vmem:[#allocation2 + $0x18] sm:$0xff]  ;;  %v610_v25 = vld [vmem:[#allocation2 + $0x3] sm:$0xff] }
  0x47   : > { %2353 = vmatmul.mubr.msk.f32.gmra.mxu1 %vm283_vm0, %v306_v15  ;;  %v611_v27 = vld [vmem:[#allocation2 + $0xb] sm:$0xff]  ;;  %v612_v28 = vld [vmem:[#allocation2 + $0x13] sm:$0xff]  ;;  %v613_v29 = vld [vmem:[#allocation2 + $0x1b] sm:$0xff]  ;;  %2398 = vmatprep.subr.mxu0 %v861_v31 }
  0x48   : > { %2357 = vmatprep.mubr.msk.f32.mxu1 %vm283_vm0, %v298_v17 }
  0x49   : > { %2369 = vmatmul.mubr.msk.f32.gmra.mxu0 %vm283_vm0, %v506_v18 }
  0x4a   : > { %2381 = vmatprep.mubr.msk.f32.mxu0 %vm283_vm0, %v717_v19 }
  0x4b   : > { %2358 = vmatmul.mubr.msk.f32.vlgmr.msra.gmra.mxu1 %vm283_vm0, %v299_v20 }
  0x4c   : > { %2372 = vmatpush3.msra.mxu1 %v2176_v13  ;;  %2360 = vmatprep.mubr.msk.f32.mxu1 %vm283_vm0, %v300_v21 }
  0x4d   : > { %2382 = vmatmul.mubr.msk.f32.vlgmr.msra.gmra.mxu0 %vm283_vm0, %v718_v22  ;;  %2387 = vmatprep.subr.mxu1 %v868_v30 }
  0x4e   : > { %2384 = vmatprep.mubr.msk.f32.mxu0 %vm283_vm0, %v719_v23  ;;  %2399 = vmatpush3.msra.mxu0 %v861_v31 }
  0x4f   : > { %2361 = vmatmul.mubr.msk.f32.gmra.mxu1 %vm283_vm0, %v301_v24  ;;  %2400 = vmatprep.subr.mxu0 %v860_v33 }
  0x50   : > { %2373 = vmatprep.mubr.msk.f32.mxu1 %vm283_vm0, %v610_v25  ;;  %2401 = vmatpush3.msra.mxu0 %v860_v33  ;;  %v1126_v33 = vld [vmem:[#allocation6 + $0x70] sm:$0xff] }
  0x51   : > { %2385 = vmatmul.mubr.msk.f32.gmra.mxu0 %vm283_vm0, %v720_v26  ;;  %2402 = vmatprep.subr.mxu0 %v859_v35 }
  0x52   : > { %2403 = vmatpush3.msra.mxu0 %v859_v35 }
  0x53   : > { %2374 = vmatmul.mubr.msk.f32.vlgmr.msra.gmra.mxu1 %vm283_vm0, %v611_v27  ;;  %2404 = vmatprep.subr.mxu0 %v858_v37 }
  0x54   : > { %2376 = vmatprep.mubr.msk.f32.mxu1 %vm283_vm0, %v612_v28  ;;  %2388 = vmatpush3.msra.mxu1 %v868_v30 }
  0x55   : > { %2389 = vmatprep.subr.mxu1 %v867_v32  ;;  %2405 = vmatpush3.msra.mxu0 %v858_v37  ;;  %v1125_v37 = vld [vmem:[#allocation6 + $0x68] sm:$0xff] }
  0x56   : > { %2390 = vmatpush3.msra.mxu1 %v867_v32  ;;  %2420 = vmatprep.subr.mxu0 %v2990_v39  ;;  %v1036_v32 = vld [vmem:[#allocation6 + $0x50] sm:$0xff] }
  0x57   : > { %2377 = vmatmul.mubr.msk.f32.gmra.mxu1 %vm283_vm0, %v613_v29  ;;  %2391 = vmatprep.subr.mxu1 %v866_v34 }
  0x58   : > { %2392 = vmatpush3.msra.mxu1 %v866_v34 }
  0x59   : > { %2393 = vmatprep.subr.mxu1 %v865_v36 }
  0x5a   : > { %2394 = vmatpush3.msra.mxu1 %v865_v36  ;;  %v1035_v36 = vld [vmem:[#allocation6 + $0x48] sm:$0xff] }
  0x5b   : > { %2409 = vmatprep.subr.mxu1 %v2988_v38 }
 0x103   : > { %v2351_v40 = vpop.f32.mrf.mxu1 }
 0x105   : > { %v387_v41 = vpop.f32.mrf.mxu1  ;;  %v2367_v42 = vpop.f32.mrf.mxu0 }
 0x107   : > { %v2354_v43 = vpop.f32.mrf.mxu1  ;;  %v587_v44 = vpop.f32.mrf.mxu0 }
 0x109   : > { %v397_v45 = vpop.f32.mrf.mxu1  ;;  %v2370_v46 = vpop.f32.mrf.mxu0 }
 0x10b   : > { %v2359_v47 = vpop.f32.mrf.mxu1  ;;  %v597_v48 = vpop.f32.mrf.mxu0 }
 0x10c   : > { %v490_v50 = vadd.f32 %v2359_v47, %v2351_v40  ;;  %v1034_v40 = vld [vmem:[#allocation6 + $0x40] sm:$0xff] }
 0x10d   : > { %v484_v49 = vpop.f32.mrf.mxu1  ;;  %v2383_v52 = vpop.f32.mrf.mxu0 }
 0x10e   : > { %v485_v53 = vadd.f32 %v484_v49, %v387_v41  ;;  %v607_v55 = vadd.f32 %v2367_v42, %v490_v50  ;;  %v1124_v41 = vld [vmem:[#allocation6 + $0x60] sm:$0xff]  ;;  %v1332_v49 = vld [vmem:[#allocation9 + $0x78] sm:$0xff]  ;;  %v1322_v50 = vld [vmem:[#allocation9 + $0x30] sm:$0xff] }
 0x10f   : > { %v2362_v51 = vpop.f32.mrf.mxu1  ;;  %v801_v58 = vpop.f32.mrf.mxu0 }
 0x110   : > { %v500_v56 = vadd.f32 %v2362_v51, %v2354_v43  ;;  %v606_v59 = vadd.f32 %v587_v44, %v485_v53  ;;  %v1216_v44 = vld [vmem:[#allocation6 + $0x90] sm:$0xff]  ;;  %v1330_v53 = vld [vmem:[#allocation9 + $0x68] sm:$0xff] }
 0x111   : > { %v494_v54 = vpop.f32.mrf.mxu1  ;;  %v2386_v5 = vpop.f32.mrf.mxu0  ;;  %v1331_v51 = vld [vmem:[#allocation9 + $0x70] sm:$0xff] }
 0x112   : > { %v495_v60 = vadd.f32 %v494_v54, %v397_v45  ;;  %v609_v1 = vadd.f32 %v2370_v46, %v500_v56  ;;  %v1215_v45 = vld [vmem:[#allocation6 + $0x88] sm:$0xff]  ;;  %v1214_v46 = vld [vmem:[#allocation6 + $0x80] sm:$0xff]  ;;  %v1319_v56 = vld [vmem:[#allocation9 + $0x18] sm:$0xff] }
 0x113   : > { %v2375_v57 = vpop.f32.mrf.mxu1  ;;  %v811_v15 = vpop.f32.mrf.mxu0  ;;  %v1320_v54 = vld [vmem:[#allocation9 + $0x20] sm:$0xff] }
 0x114   : > { %v714_v61 = vadd.f32 %v2375_v57, %v607_v55  ;;  %v608_v6 = vadd.f32 %v597_v48, %v495_v60  ;;  %v1323_v48 = vld [vmem:[#allocation9 + $0x38] sm:$0xff]  ;;  %v1329_v55 = vld [vmem:[#allocation9 + $0x60] sm:$0xff]  ;;  %v1317_v60 = vld [vmem:[#allocation9 + $0x8] sm:$0xff] }
 0x115   : > { %v694_v63 = vpop.f32.mrf.mxu1  ;;  %v1328_v57 = vld [vmem:[#allocation9 + $0x58] sm:$0xff] }
 0x116   : > { %v821_v2 = vadd.f32 %v2383_v52, %v714_v61  ;;  %v713_v3 = vadd.f32 %v694_v63, %v606_v59  ;;  %v1321_v52 = vld [vmem:[#allocation9 + $0x28] sm:$0xff]  ;;  %v1327_v59 = vld [vmem:[#allocation9 + $0x50] sm:$0xff]  ;;  %v1325_v63 = vld [vmem:[#allocation9 + $0x40] sm:$0xff] }
 0x117   : > { %v2378_v4 = vpop.f32.mrf.mxu1  ;;  %v1326_v61 = vld [vmem:[#allocation9 + $0x48] sm:$0xff] }
 0x118   : > { %v829_v7 = vadd.f32 %v2186_v62, %v821_v2  ;;  %v820_v8 = vadd.f32 %v801_v58, %v713_v3  ;;  %v716_v9 = vadd.f32 %v2378_v4, %v609_v1  ;;  %v1318_v58 = vld [vmem:[#allocation9 + $0x10] sm:$0xff] }
 0x119   : > { %v704_v10 = vpop.f32.mrf.mxu1 }
 0x11a   : > { %v833_v11 = vmax.f32 %v829_v7, 0.0  ;;  %v828_v12 = vadd.f32 %v2186_v62, %v820_v8  ;;  %v823_v13 = vadd.f32 %v2386_v5, %v716_v9  ;;  %v715_v14 = vadd.f32 %v704_v10, %v608_v6 }
 0x11c   : > { %838 = vst.msk [vmem:[#allocation3 + $0x8] sm:$0xff] %vm836_vm2, %v833_v11  ;;  %v832_v16 = vmax.f32 %v828_v12, 0.0  ;;  %v831_v17 = vadd.f32 %v2186_v62, %v823_v13  ;;  %v822_v18 = vadd.f32 %v811_v15, %v715_v14  ;;  %v2197_v14 = vld [vmem:[%s3204_s5 + $0x1] ss:$0 sm:$0xff] }
 0x11e   : > { %837 = vst.msk [vmem:[#allocation3] sm:$0xff] %vm836_vm2, %v832_v16  ;;  %v835_v19 = vmax.f32 %v831_v17, 0.0  ;;  %v830_v20 = vadd.f32 %v2186_v62, %v822_v18  ;;  %v1316_v62 = vld [vmem:[#allocation9] sm:$0xff] }
 0x120   : > { %840 = vst.msk [vmem:[#allocation3 + $0x18] sm:$0xff] %vm836_vm2, %v835_v19  ;;  %v834_v21 = vmax.f32 %v830_v20, 0.0 }
 0x122   : > { %839 = vst.msk [vmem:[#allocation3 + $0x10] sm:$0xff] %vm836_vm2, %v834_v21 }
 0x125   : > { %v845_v22 = vld [vmem:[#allocation3] ss:$2 sm:$0xff]  ;;  %v849_v23 = vld [vmem:[#allocation3 + $0x1] ss:$2 sm:$0xff] }
 0x126   : > { %v852_v24 = vmax.f32 %v845_v22, %v849_v23 }
 0x128   : > { %854 = vst.msk [vmem:[#allocation4 + $0x2] sm:$0xff] %vm836_vm2, %v852_v24 }
 0x129   : > { %v847_v25 = vld [vmem:[#allocation3 + $0x10] ss:$2 sm:$0xff]  ;;  %v851_v26 = vld [vmem:[#allocation3 + $0x11] ss:$2 sm:$0xff] }
 0x12a   : > { %v853_v27 = vmax.f32 %v847_v25, %v851_v26 }
 0x12c   : > { %855 = vst.msk [vmem:[#allocation4 + $0xa] sm:$0xff] %vm836_vm2, %v853_v27  ;;  %v1570_v27 = vld [vmem:[#allocation9 + $0xf8] sm:$0xff] }
 0x12f   : > { %v862_v28 = vld [vmem:[#allocation4 + $0x1] sm:$0xff] }
 0x130   : > { %v856_v29 = vld [vmem:[#allocation4] sm:$0xff]  ;;  %2395 = vmatprep.mubr.msk.f32.mxu1 %vm836_vm2, %v862_v28 }
 0x131   : > { %2406 = vmatprep.mubr.msk.f32.mxu0 %vm836_vm2, %v856_v29  ;;  %v1031_v35 = vld [vmem:[#allocation4 + $0x2] sm:$0xff] }
 0x132   : > { %v1487_v29 = vld [vmem:[#allocation9 + $0xb8] sm:$0xff] }
 0x133   : > { %v863_v30 = vld [vmem:[#allocation4 + $0x9] sm:$0xff] }
 0x134   : > { %v857_v31 = vld [vmem:[#allocation4 + $0x8] sm:$0xff]  ;;  %2396 = vmatmul.mubr.msk.f32.vlgmr.msra.gmra.mxu1 %vm836_vm2, %v863_v30  ;;  %v1569_v30 = vld [vmem:[#allocation9 + $0xf0] sm:$0xff] }
 0x135   : > { %2407 = vmatmul.mubr.msk.f32.vlgmr.msra.gmra.mxu0 %vm836_vm2, %v857_v31  ;;  %v1121_v34 = vld [vmem:[#allocation4 + $0x3] sm:$0xff]  ;;  %2410 = vmatpush3.msra.mxu1 %v2988_v38  ;;  %v1122_v42 = vld [vmem:[#allocation4 + $0xb] sm:$0xff] }
 0x136   : > { %2421 = vmatpush3.msra.mxu0 %v2990_v39  ;;  %2411 = vmatprep.subr.mxu1 %v1036_v32  ;;  %v1217_v38 = vld [vmem:[#allocation6 + $0x98] sm:$0xff]  ;;  %v1486_v31 = vld [vmem:[#allocation9 + $0xb0] sm:$0xff] }
 0x137   : > { %2417 = vmatprep.mubr.msk.f32.mxu1 %vm836_vm2, %v1031_v35  ;;  %2422 = vmatprep.subr.mxu0 %v1126_v33  ;;  %v1032_v39 = vld [vmem:[#allocation4 + $0xa] sm:$0xff] }
 0x138   : > { %2428 = vmatprep.mubr.msk.f32.mxu0 %vm836_vm2, %v1121_v34  ;;  %2412 = vmatpush3.msra.mxu1 %v1036_v32  ;;  %v1211_v43 = vld [vmem:[#allocation4 + $0x4] sm:$0xff]  ;;  %v1212_v47 = vld [vmem:[#allocation4 + $0xc] sm:$0xff]  ;;  %v1568_v32 = vld [vmem:[#allocation9 + $0xe8] sm:$0xff] }
 0x139   : > { %2423 = vmatpush3.msra.mxu0 %v1126_v33  ;;  %2413 = vmatprep.subr.mxu1 %v1035_v36  ;;  %v1485_v33 = vld [vmem:[#allocation9 + $0xa8] sm:$0xff]  ;;  %v1567_v34 = vld [vmem:[#allocation9 + $0xe0] sm:$0xff] }
 0x13a   : > { %2424 = vmatprep.subr.mxu0 %v1125_v37  ;;  %2414 = vmatpush3.msra.mxu1 %v1035_v36  ;;  %v1484_v35 = vld [vmem:[#allocation9 + $0xa0] sm:$0xff]  ;;  %v1566_v36 = vld [vmem:[#allocation9 + $0xd8] sm:$0xff] }
 0x13b   : > { %2425 = vmatpush3.msra.mxu0 %v1125_v37  ;;  %2415 = vmatprep.subr.mxu1 %v1034_v40  ;;  %v1483_v37 = vld [vmem:[#allocation9 + $0x98] sm:$0xff] }
 0x13c   : > { %2426 = vmatprep.subr.mxu0 %v1124_v41  ;;  %2416 = vmatpush3.msra.mxu1 %v1034_v40  ;;  %v1565_v40 = vld [vmem:[#allocation9 + $0xd0] sm:$0xff] }
 0x13d   : > { %2427 = vmatpush3.msra.mxu0 %v1124_v41  ;;  %2418 = vmatmul.mubr.msk.f32.vlgmr.msra.gmra.mxu1 %vm836_vm2, %v1032_v39  ;;  %v1482_v41 = vld [vmem:[#allocation9 + $0x90] sm:$0xff]  ;;  %v1481_v39 = vld [vmem:[#allocation9 + $0x88] sm:$0xff] }
 0x13e   : > { %2429 = vmatmul.mubr.msk.f32.vlgmr.msra.gmra.mxu0 %vm836_vm2, %v1122_v42  ;;  %2431 = vmatprep.subr.mxu1 %v1217_v38  ;;  %v1563_v42 = vld [vmem:[#allocation9 + $0xc0] sm:$0xff] }
 0x13f   : > { %2439 = vmatprep.mubr.msk.f32.mxu1 %vm836_vm2, %v1211_v43  ;;  %2432 = vmatpush3.msra.mxu1 %v1217_v38  ;;  %v1564_v38 = vld [vmem:[#allocation9 + $0xc8] sm:$0xff] }
 0x140   : > { %2442 = vmatprep.subr.mxu0 %v2803_v0  ;;  %2433 = vmatprep.subr.mxu1 %v1216_v44 }
 0x141   : > { %2434 = vmatpush3.msra.mxu1 %v1216_v44  ;;  %2443 = vmatpush3.msra.mxu0 %v1332_v49  ;;  %v1480_v44 = vld [vmem:[#allocation9 + $0x80] sm:$0xff]  ;;  %v1652_v49 = vld [vmem:[#allocation9 + $0x130] sm:$0xff] }
 0x142   : > { %2435 = vmatprep.subr.mxu1 %v1215_v45  ;;  %2444 = vmatprep.subr.mxu0 %v2803_v0 }
 0x143   : > { %2436 = vmatpush3.msra.mxu1 %v1215_v45  ;;  %2445 = vmatpush3.msra.mxu0 %v1331_v51  ;;  %v1736_v45 = vld [vmem:[#allocation9 + $0x178] sm:$0xff]  ;;  %v1651_v51 = vld [vmem:[#allocation9 + $0x128] sm:$0xff] }
 0x144   : > { %2437 = vmatprep.subr.mxu1 %v1214_v46  ;;  %2446 = vmatprep.subr.mxu0 %v2803_v0 }
 0x145   : > { %2438 = vmatpush3.msra.mxu1 %v1214_v46  ;;  %2447 = vmatpush3.msra.mxu0 %v1330_v53  ;;  %v1650_v53 = vld [vmem:[#allocation9 + $0x120] sm:$0xff] }
 0x146   : > { %2440 = vmatmul.mubr.msk.f32.vlgmr.msra.gmra.mxu1 %vm836_vm2, %v1212_v47  ;;  %2461 = vmatprep.subr.mxu1 %v2803_v0  ;;  %v1653_v47 = vld [vmem:[#allocation9 + $0x138] sm:$0xff] }
 0x147   : > { %2462 = vmatpush3.msra.mxu1 %v1323_v48  ;;  %2448 = vmatprep.subr.mxu0 %v2803_v0  ;;  %v1735_v48 = vld [vmem:[#allocation9 + $0x170] sm:$0xff] }
 0x148   : > { %2463 = vmatprep.subr.mxu1 %v2803_v0  ;;  %2449 = vmatpush3.msra.mxu0 %v1329_v55  ;;  %v1649_v55 = vld [vmem:[#allocation9 + $0x118] sm:$0xff] }
 0x149   : > { %2464 = vmatpush3.msra.mxu1 %v1322_v50  ;;  %2450 = vmatprep.subr.mxu0 %v2803_v0  ;;  %v1734_v50 = vld [vmem:[#allocation9 + $0x168] sm:$0xff] }
 0x14a   : > { %2465 = vmatprep.subr.mxu1 %v2803_v0  ;;  %2451 = vmatpush3.msra.mxu0 %v1328_v57  ;;  %v1648_v57 = vld [vmem:[#allocation9 + $0x110] sm:$0xff] }
 0x14b   : > { %2466 = vmatpush3.msra.mxu1 %v1321_v52  ;;  %2452 = vmatprep.subr.mxu0 %v2803_v0  ;;  %v1733_v52 = vld [vmem:[#allocation9 + $0x160] sm:$0xff] }
 0x14c   : > { %2467 = vmatprep.subr.mxu1 %v2803_v0  ;;  %2453 = vmatpush3.msra.mxu0 %v1327_v59  ;;  %v1647_v59 = vld [vmem:[#allocation9 + $0x108] sm:$0xff] }
 0x14d   : > { %2468 = vmatpush3.msra.mxu1 %v1320_v54  ;;  %2454 = vmatprep.subr.mxu0 %v2803_v0  ;;  %v1732_v54 = vld [vmem:[#allocation9 + $0x158] sm:$0xff] }
 0x14e   : > { %2469 = vmatprep.subr.mxu1 %v2803_v0  ;;  %2455 = vmatpush3.msra.mxu0 %v1326_v61 }
 0x14f   : > { %2470 = vmatpush3.msra.mxu1 %v1319_v56  ;;  %2456 = vmatprep.subr.mxu0 %v2803_v0  ;;  %v1731_v56 = vld [vmem:[#allocation9 + $0x150] sm:$0xff] }
 0x150   : > { %2471 = vmatprep.subr.mxu1 %v2803_v0  ;;  %2477 = vmatprep.mubr.msk.f32.mxu1 %vm2804_vm4, %v2803_v0 }
 0x151   : > { %2472 = vmatpush3.msra.mxu1 %v1318_v58  ;;  %2457 = vmatpush3.msra.mxu0 %v1325_v63  ;;  %v1730_v58 = vld [vmem:[#allocation9 + $0x148] sm:$0xff]  ;;  %v1902_v63 = vld [vmem:[#allocation9 + $0x1f8] sm:$0xff] }
 0x152   : > { %2473 = vmatprep.subr.mxu1 %v2803_v0  ;;  %2458 = vmatprep.mubr.msk.f32.mxu0 %vm2804_vm4, %v2803_v0 }
 0x153   : > { %2474 = vmatpush3.msra.mxu1 %v1317_v60  ;;  %2480 = vmatprep.subr.mxu0 %v2803_v0  ;;  %v1729_v60 = vld [vmem:[#allocation9 + $0x140] sm:$0xff] }
 0x154   : > { %2475 = vmatprep.subr.mxu1 %v2803_v0 }
 0x155   : > { %2476 = vmatpush3.msra.mxu1 %v1316_v62  ;;  %v1646_v62 = vld [vmem:[#allocation9 + $0x100] sm:$0xff] }
 0x156   : > { %2499 = vmatprep.subr.mxu1 %v2803_v0 }
 0x1f4   : > { %v2397_v1 = vpop.f32.mrf.mxu1 }
 0x1f5   : > { %v2408_v2 = vpop.f32.mrf.mxu0 }
 0x1f6   : > { %v941_v3 = vpop.f32.mrf.mxu1  ;;  %v1028_v6 = vadd.f32 %v2408_v2, %v2397_v1  ;;  %v1819_v2 = vld [vmem:[#allocation9 + $0x1b8] sm:$0xff] }
 0x1f7   : > { %v1022_v5 = vpop.f32.mrf.mxu0 }
 0x1f8   : > { %v1023_v8 = vadd.f32 %v1022_v5, %v941_v3  ;;  %v1901_v3 = vld [vmem:[#allocation9 + $0x1f0] sm:$0xff]  ;;  %v1900_v5 = vld [vmem:[#allocation9 + $0x1e8] sm:$0xff] }
 0x1fd   : > { %v2419_v4 = vpop.f32.mrf.mxu1 }
 0x1fe   : > { %v1120_v9 = vadd.f32 %v2419_v4, %v1028_v6  ;;  %v2430_v10 = vpop.f32.mrf.mxu0  ;;  %v1818_v4 = vld [vmem:[#allocation9 + $0x1b0] sm:$0xff]  ;;  %v1817_v6 = vld [vmem:[#allocation9 + $0x1a8] sm:$0xff] }
 0x1ff   : > { %v1110_v7 = vpop.f32.mrf.mxu1 }
 0x200   : > { %v1119_v11 = vadd.f32 %v1110_v7, %v1023_v8  ;;  %v1210_v12 = vadd.f32 %v2430_v10, %v1120_v9  ;;  %v1200_v13 = vpop.f32.mrf.mxu0  ;;  %v1899_v7 = vld [vmem:[#allocation9 + $0x1e0] sm:$0xff]  ;;  %v1898_v9 = vld [vmem:[#allocation9 + $0x1d8] sm:$0xff] }
 0x201   : > { %v1816_v8 = vld [vmem:[#allocation9 + $0x1a0] sm:$0xff]  ;;  %v1815_v10 = vld [vmem:[#allocation9 + $0x198] sm:$0xff] }
 0x202   : > { %v1209_v16 = vadd.f32 %v1200_v13, %v1119_v11  ;;  %v1897_v11 = vld [vmem:[#allocation9 + $0x1d0] sm:$0xff]  ;;  %v1896_v13 = vld [vmem:[#allocation9 + $0x1c8] sm:$0xff] }
 0x206   : > { %v2441_v15 = vpop.f32.mrf.mxu1 }
 0x207   : > { %v1300_v17 = vadd.f32 %v2441_v15, %v1210_v12  ;;  %v1814_v12 = vld [vmem:[#allocation9 + $0x190] sm:$0xff]  ;;  %v1895_v15 = vld [vmem:[#allocation9 + $0x1c0] sm:$0xff] }
 0x208   : > { %v1290_v18 = vpop.f32.mrf.mxu1 }
 0x209   : > { %v1306_v19 = vadd.f32 %v2197_v14, %v1300_v17  ;;  %v1299_v20 = vadd.f32 %v1290_v18, %v1209_v16  ;;  %v1812_v17 = vld [vmem:[#allocation9 + $0x180] sm:$0xff] }
 0x20b   : > { %v1308_v21 = vmax.f32 %v1306_v19, 0.0  ;;  %v1305_v22 = vadd.f32 %v2197_v14, %v1299_v20  ;;  %v1813_v14 = vld [vmem:[#allocation9 + $0x188] sm:$0xff]  ;;  %v1986_v19 = vld [vmem:[%s3203_s4 + $0x38] sm:$0xff]  ;;  %v1985_v20 = vld [vmem:[%s3203_s4 + $0x30] sm:$0xff] }
 0x20d   : > { %1311 = vst.msk [vmem:[#allocation5 + $0x8] sm:$0xff] %vm1309_vm5, %v1308_v21  ;;  %v1307_v23 = vmax.f32 %v1305_v22, 0.0  ;;  %v1984_v21 = vld [vmem:[%s3203_s4 + $0x28] sm:$0xff]  ;;  %v1983_v22 = vld [vmem:[%s3203_s4 + $0x20] sm:$0xff] }
 0x20f   : > { %1310 = vst.msk [vmem:[#allocation5] sm:$0xff] %vm1309_vm5, %v1307_v23  ;;  %v1982_v23 = vld [vmem:[%s3203_s4 + $0x18] sm:$0xff] }
 0x216   : > { %v1312_v24 = vld [vmem:[#allocation5] ss:$2 sm:$0xff]  ;;  %v1314_v25 = vld [vmem:[#allocation5 + $0x1] ss:$2 sm:$0xff] }
 0x217   : > { %v3042_v26 = vmax.f32 %v1312_v24, %v1314_v25  ;;  %v1981_v24 = vld [vmem:[%s3203_s4 + $0x10] sm:$0xff]  ;;  %v1980_v25 = vld [vmem:[%s3203_s4 + $0x8] sm:$0xff] }
 0x219   : > { %2478 = vmatmul.mubr.msk.f32.vlgmr.msra.gmra.mxu1 %vm1309_vm5, %v3042_v26  ;;  %v1334_v28 = vrot.slane %v3042_v26, 1  ;;  %v1571_v43 = vrot.slane %v3042_v26, 3  ;;  %v1488_v46 = vrot.slane %v3042_v26, 2  ;;  %v1737_v61 = vrot.slane %v3042_v26, 5 }
 0x21a   : > { %2500 = vmatpush3.msra.mxu1 %v1570_v27  ;;  %2515 = vmatprep.mubr.msk.f32.mxu1 %vm2804_vm4, %v2803_v0  ;;  %v1654_v1 = vrot.slane %v3042_v26, 4  ;;  %v1903_v16 = vrot.slane %v3042_v26, 7  ;;  %v1820_v18 = vrot.slane %v3042_v26, 6  ;;  %v1979_v26 = vld [vmem:[%s3203_s4] sm:$0xff] }
 0x21b   : > { %2501 = vmatprep.subr.mxu1 %v2803_v0  ;;  %2459 = vmatmul.mubr.msk.f32.vlgmr.msra.gmra.mxu0 %vm1309_vm5, %v1334_v28 }
 0x21c   : > { %2481 = vmatpush3.msra.mxu0 %v1487_v29  ;;  %2502 = vmatpush3.msra.mxu1 %v1569_v30 }
 0x21d   : > { %2482 = vmatprep.subr.mxu0 %v2803_v0  ;;  %2503 = vmatprep.subr.mxu1 %v2803_v0 }
 0x21e   : > { %2483 = vmatpush3.msra.mxu0 %v1486_v31  ;;  %2504 = vmatpush3.msra.mxu1 %v1568_v32 }
 0x21f   : > { %2484 = vmatprep.subr.mxu0 %v2803_v0  ;;  %2505 = vmatprep.subr.mxu1 %v2803_v0 }
 0x220   : > { %2485 = vmatpush3.msra.mxu0 %v1485_v33  ;;  %2506 = vmatpush3.msra.mxu1 %v1567_v34 }
 0x221   : > { %2486 = vmatprep.subr.mxu0 %v2803_v0  ;;  %2507 = vmatprep.subr.mxu1 %v2803_v0 }
 0x222   : > { %2487 = vmatpush3.msra.mxu0 %v1484_v35  ;;  %2508 = vmatpush3.msra.mxu1 %v1566_v36 }
 0x223   : > { %2488 = vmatprep.subr.mxu0 %v2803_v0  ;;  %2509 = vmatprep.subr.mxu1 %v2803_v0 }
 0x224   : > { %2489 = vmatpush3.msra.mxu0 %v1483_v37  ;;  %2510 = vmatpush3.msra.mxu1 %v1565_v40 }
 0x225   : > { %2490 = vmatprep.subr.mxu0 %v2803_v0  ;;  %2511 = vmatprep.subr.mxu1 %v2803_v0 }
 0x226   : > { %2491 = vmatpush3.msra.mxu0 %v1482_v41  ;;  %2512 = vmatpush3.msra.mxu1 %v1564_v38 }
 0x227   : > { %2492 = vmatprep.subr.mxu0 %v2803_v0  ;;  %2513 = vmatprep.subr.mxu1 %v2803_v0 }
 0x228   : > { %2493 = vmatpush3.msra.mxu0 %v1481_v39  ;;  %2514 = vmatpush3.msra.mxu1 %v1563_v42 }
 0x229   : > { %2494 = vmatprep.subr.mxu0 %v2803_v0  ;;  %2516 = vmatmul.mubr.msk.f32.vlgmr.msra.gmra.mxu1 %vm1309_vm5, %v1571_v43 }
 0x22a   : > { %2537 = vmatprep.subr.mxu1 %v2803_v0  ;;  %2495 = vmatpush3.msra.mxu0 %v1480_v44 }
 0x22b   : > { %2496 = vmatprep.mubr.msk.f32.mxu0 %vm2804_vm4, %v2803_v0  ;;  %2538 = vmatpush3.msra.mxu1 %v1736_v45 }
 0x22c   : > { %2497 = vmatmul.mubr.msk.f32.vlgmr.msra.gmra.mxu0 %vm1309_vm5, %v1488_v46  ;;  %2518 = vmatprep.subr.mxu0 %v2803_v0 }
 0x22d   : > { %2539 = vmatprep.subr.mxu1 %v2803_v0  ;;  %2519 = vmatpush3.msra.mxu0 %v1653_v47  ;;  %v281_v47 = vld [vmem:[%s3204_s5 + $0x2] sm:$0x1] }
 0x22e   : > { %2540 = vmatpush3.msra.mxu1 %v1735_v48  ;;  %2520 = vmatprep.subr.mxu0 %v2803_v0 }
 0x22f   : > { %2541 = vmatprep.subr.mxu1 %v2803_v0  ;;  %2521 = vmatpush3.msra.mxu0 %v1652_v49 }
 0x230   : > { %2542 = vmatpush3.msra.mxu1 %v1734_v50  ;;  %2522 = vmatprep.subr.mxu0 %v2803_v0 }
 0x231   : > { %2543 = vmatprep.subr.mxu1 %v2803_v0  ;;  %2523 = vmatpush3.msra.mxu0 %v1651_v51 }
 0x232   : > { %2544 = vmatpush3.msra.mxu1 %v1733_v52  ;;  %2524 = vmatprep.subr.mxu0 %v2803_v0  ;;  %v282_v52 = vld [vmem:[%s3204_s5 + $0x3] sm:$0x1] }
 0x233   : > { %2545 = vmatprep.subr.mxu1 %v2803_v0  ;;  %2525 = vmatpush3.msra.mxu0 %v1650_v53 }
 0x234   : > { %2546 = vmatpush3.msra.mxu1 %v1732_v54  ;;  %2526 = vmatprep.subr.mxu0 %v2803_v0 }
 0x235   : > { %2547 = vmatprep.subr.mxu1 %v2803_v0  ;;  %2527 = vmatpush3.msra.mxu0 %v1649_v55 }
 0x236   : > { %2548 = vmatpush3.msra.mxu1 %v1731_v56  ;;  %2528 = vmatprep.subr.mxu0 %v2803_v0 }
 0x237   : > { %2549 = vmatprep.subr.mxu1 %v2803_v0  ;;  %2529 = vmatpush3.msra.mxu0 %v1648_v57 }
 0x238   : > { %2550 = vmatpush3.msra.mxu1 %v1730_v58  ;;  %2530 = vmatprep.subr.mxu0 %v2803_v0 }
 0x239   : > { %2551 = vmatprep.subr.mxu1 %v2803_v0  ;;  %2531 = vmatpush3.msra.mxu0 %v1647_v59 }
 0x23a   : > { %2552 = vmatpush3.msra.mxu1 %v1729_v60  ;;  %2553 = vmatprep.mubr.msk.f32.mxu1 %vm2804_vm4, %v2803_v0 }
 0x23b   : > { %2532 = vmatprep.subr.mxu0 %v2803_v0  ;;  %2554 = vmatmul.mubr.msk.f32.vlgmr.msra.gmra.mxu1 %vm1309_vm5, %v1737_v61 }
 0x23c   : > { %2575 = vmatprep.subr.mxu1 %v2803_v0  ;;  %2533 = vmatpush3.msra.mxu0 %v1646_v62 }
 0x23d   : > { %2534 = vmatprep.mubr.msk.f32.mxu0 %vm2804_vm4, %v2803_v0  ;;  %2576 = vmatpush3.msra.mxu1 %v1902_v63 }
 0x23e   : > { %2535 = vmatmul.mubr.msk.f32.vlgmr.msra.gmra.mxu0 %vm1309_vm5, %v1654_v1  ;;  %2556 = vmatprep.subr.mxu0 %v2803_v0 }
 0x23f   : > { %2577 = vmatprep.subr.mxu1 %v2803_v0  ;;  %2557 = vmatpush3.msra.mxu0 %v1819_v2 }
 0x240   : > { %2578 = vmatpush3.msra.mxu1 %v1901_v3  ;;  %2558 = vmatprep.subr.mxu0 %v2803_v0 }
 0x241   : > { %2579 = vmatprep.subr.mxu1 %v2803_v0  ;;  %2559 = vmatpush3.msra.mxu0 %v1818_v4 }
 0x242   : > { %2580 = vmatpush3.msra.mxu1 %v1900_v5  ;;  %2560 = vmatprep.subr.mxu0 %v2803_v0 }
 0x243   : > { %2581 = vmatprep.subr.mxu1 %v2803_v0  ;;  %2561 = vmatpush3.msra.mxu0 %v1817_v6 }
 0x244   : > { %2582 = vmatpush3.msra.mxu1 %v1899_v7  ;;  %2562 = vmatprep.subr.mxu0 %v2803_v0 }
 0x245   : > { %2583 = vmatprep.subr.mxu1 %v2803_v0  ;;  %2563 = vmatpush3.msra.mxu0 %v1816_v8 }
 0x246   : > { %2584 = vmatpush3.msra.mxu1 %v1898_v9  ;;  %2564 = vmatprep.subr.mxu0 %v2803_v0 }
 0x247   : > { %2585 = vmatprep.subr.mxu1 %v2803_v0  ;;  %2565 = vmatpush3.msra.mxu0 %v1815_v10 }
 0x248   : > { %2586 = vmatpush3.msra.mxu1 %v1897_v11  ;;  %2566 = vmatprep.subr.mxu0 %v2803_v0 }
 0x249   : > { %2587 = vmatprep.subr.mxu1 %v2803_v0  ;;  %2567 = vmatpush3.msra.mxu0 %v1814_v12 }
 0x24a   : > { %2588 = vmatpush3.msra.mxu1 %v1896_v13  ;;  %2568 = vmatprep.subr.mxu0 %v2803_v0 }
 0x24b   : > { %2589 = vmatprep.subr.mxu1 %v2803_v0  ;;  %2569 = vmatpush3.msra.mxu0 %v1813_v14 }
 0x24c   : > { %2590 = vmatpush3.msra.mxu1 %v1895_v15  ;;  %2591 = vmatprep.mubr.msk.f32.mxu1 %vm2804_vm4, %v2803_v0 }
 0x24d   : > { %2570 = vmatprep.subr.mxu0 %v2803_v0  ;;  %2592 = vmatmul.mubr.msk.f32.vlgmr.msra.gmra.mxu1 %vm1309_vm5, %v1903_v16 }
 0x24e   : > { %2571 = vmatpush3.msra.mxu0 %v1812_v17  ;;  %2572 = vmatprep.mubr.msk.f32.mxu0 %vm2804_vm4, %v2803_v0 }
 0x24f   : > { %2573 = vmatmul.mubr.msk.f32.vlgmr.msra.gmra.mxu0 %vm1309_vm5, %v1820_v18  ;;  %2594 = vmatprep.subr.mxu0 %v2803_v0 }
 0x250   : > { %2610 = vmatprep.mubr.msk.f32.mxu0 %vm2804_vm4, %v2803_v0  ;;  %2595 = vmatpush3.msra.mxu0 %v1986_v19 }
 0x251   : > { %2596 = vmatprep.subr.mxu0 %v2803_v0 }
 0x252   : > { %2597 = vmatpush3.msra.mxu0 %v1985_v20 }
 0x253   : > { %2598 = vmatprep.subr.mxu0 %v2803_v0 }
 0x254   : > { %2599 = vmatpush3.msra.mxu0 %v1984_v21 }
 0x255   : > { %2600 = vmatprep.subr.mxu0 %v2803_v0 }
 0x256   : > { %2601 = vmatpush3.msra.mxu0 %v1983_v22 }
 0x257   : > { %2602 = vmatprep.subr.mxu0 %v2803_v0 }
 0x258   : > { %2603 = vmatpush3.msra.mxu0 %v1982_v23 }
 0x259   : > { %2604 = vmatprep.subr.mxu0 %v2803_v0 }
 0x25a   : > { %2605 = vmatpush3.msra.mxu0 %v1981_v24 }
 0x25b   : > { %2606 = vmatprep.subr.mxu0 %v2803_v0 }
 0x25c   : > { %2607 = vmatpush3.msra.mxu0 %v1980_v25 }
 0x25d   : > { %2608 = vmatprep.subr.mxu0 %v2803_v0 }
 0x25e   : > { %2609 = vmatpush3.msra.mxu0 %v1979_v26 }
 0x2d9   : > { %v1475_v27 = vpop.f32.mrf.mxu1 }
 0x2db   : > { %v1403_v28 = vpop.f32.mrf.mxu0  ;;  %v2479_v29 = vpop.f32.mrf.mxu1 }
 0x2dc   : > { %v1476_v41 = vadd.f32 %v1475_v27, %v1403_v28 }
 0x2dd   : > { %v2460_v30 = vpop.f32.mrf.mxu0 }
 0x2e9   : > { %v1640_v31 = vpop.f32.mrf.mxu1 }
 0x2eb   : > { %v2517_v32 = vpop.f32.mrf.mxu1 }
 0x2ec   : > { %v1557_v33 = vpop.f32.mrf.mxu0 }
 0x2ed   : > { %v1561_v0 = vadd.f32 %v1557_v33, %v1476_v41 }
 0x2ee   : > { %v2498_v34 = vpop.f32.mrf.mxu0 }
 0x2ef   : > { %v1644_v38 = vadd.f32 %v1640_v31, %v1561_v0 }
 0x2fb   : > { %v1806_v35 = vpop.f32.mrf.mxu1 }
 0x2fd   : > { %v2555_v36 = vpop.f32.mrf.mxu1 }
 0x2fe   : > { %v1723_v37 = vpop.f32.mrf.mxu0 }
 0x2ff   : > { %v1727_v39 = vadd.f32 %v1723_v37, %v1644_v38 }
 0x300   : > { %v2536_v40 = vpop.f32.mrf.mxu0 }
 0x301   : > { %v1810_v43 = vadd.f32 %v1806_v35, %v1727_v39 }
 0x30d   : > { %v1972_v42 = vpop.f32.mrf.mxu1 }
 0x30f   : > { %v1889_v44 = vpop.f32.mrf.mxu0  ;;  %v2593_v45 = vpop.f32.mrf.mxu1 }
 0x310   : > { %v1893_v46 = vadd.f32 %v1889_v44, %v1810_v43 }
 0x311   : > { %v2574_v48 = vpop.f32.mrf.mxu0 }
 0x312   : > { %v1976_v49 = vadd.f32 %v1972_v42, %v1893_v46 }
 0x314   : > { %v1977_v50 = vadd.f32 %v1976_v49, %v281_v47 }
 0x316   : > { %v1978_v51 = vmax.f32 %v1977_v50, 0.0 }
 0x318   : > { %2611 = vmatmul.mubr.msk.f32.vlgmr.msra.gmra.mxu0 %vm1309_vm5, %v1978_v51 }
 0x3d8   : > { %v2056_v53 = vpop.f32.mrf.mxu0 }
 0x3d9   : > { %v2057_v54 = vadd.f32 %v2056_v53, %v282_v52 }
 0x3da   : > { %v2612_v55 = vpop.f32.mrf.mxu0 }
 0x3db   : > { %2061 = vst.msk [vmem:[%s273_s19] sm:$0x1] %vm2060_vm6, %v2057_v54 }
 0x3dc   : > { %2742 = shalt.err (!%p2739_p3)
}
 0x3dd   : > { %s2743_s13 = scalar_lea.hbm %s3164_s29, 16  ;;  %s2747_s16 = scalar_lea.hbm %s3205_s6, 32 }
 0x3de   : > { %p2744_p2 = scmp.ne.s32.totalorder %s3164_s29, %s2743_s13  ;;  %p2748_p7 = scmp.lt.s32.totalorder %s3164_s29, %s3205_s6 }
 0x3df   : > { %p2749_p6 = scmp.lt.s32.totalorder %s2747_s16, %s2743_s13 }
 0x3e0   : > { %p2745_p4 = pnand %p2744_p2, %p2879_p5 }
 0x3e1   : > { %p2750_p9 = por %p2749_p6, %p2748_p7 }
 0x3e2   : > { %p2746_p13 = pneg %p2745_p4 }
 0x3e4   : > { %p2751_p10 = pnand %p2750_p9, %p2746_p13 }
 0x3e6   : > { %2754 = shalt.err (!%p2751_p10)
}
 0x3e7   : > { %2621 = dma.vmem_to_hbm [thread:$0]  (%p2879_p5), %s2076_s20, 16, %s3164_s29, %s2063_s9  }
 0x3e8 PF: > { %p2638_p12 = scmp.ge.s32.totalorder %s2797_s24, 2  ;;  %s2087_s19 = sand.u32 1, %s2785_s21  }
 0x3e9   : > { %p3215_p8 = scmp.ne.s32.totalorder %s3208_s8, 0  ;;  %s2088_s26 = scalar_lea.sflag [#allocation8], %s2087_s19 }
 0x3eb   : > { %p2631_p11 = pnand %p2638_p12, %p3215_p8 }
 0x3ed   : > { %p2632_p0 = pneg %p2631_p11 }
 0x3ef   : > { %2780 = dma.done.wait (%p2632_p0), %s2088_s26, 16  }
 0x3f0   : > { %2782 = vsyncadd (%p2632_p0), %s2088_s26, 4294967280  ;;  %p18_p1 = scmp.ge.s32.totalorder %s2866_s27, 4   ;;  %s3216_s21 = smov %s2789_s22 }
 0x3f1   : > { %s3217_s22 = smov %s2793_s23  ;;  %s3218_s23 = smov %s2877_s30 }
 0x3f2   : > { %s3219_s24 = smov %s2866_s27  ;;  %20 = sbr.rel (!%p18_p1) target bundleno = 5 (0x5), region = 107 }
 0x3f7   :  { %2092 = vsyncpa [#allocation7], 1 }
 0x3f8   :  { %2094 = vsyncpa [#allocation7 + $0x1], 1 }
 0x3f9   :  { %2095 = vsyncpa [#allocation10], 1 }
 0x3fa   :  { %2096 = vsyncpa [#allocation8], 1 }
 0x3fb   :  { %2098 = vsyncpa [#allocation8 + $0x1], 1 }

</bundles_post_ra>
